<compile_context>
chip_gen: v7x
topology: tpu7x:2x2x1
jax: 0.10.0
libtpu: 0.0.40
codegen_flags: <defaults>
</compile_context>

<pallas_src>
import functools

import jax
import jax.numpy as jnp
import numpy as np
from jax import lax
from jax.experimental import pallas as pl
from jax.experimental.pallas import tpu as pltpu

H = 32       # encoder.hidden_size
LATENT = 16  # latent_dim
S = 8        # sentence splits per paragraph (== max_split_num)
B = 2        # batch size


def _rup(x, m):
    return (x + m - 1) // m * m


def _kl_rowwise(mu1, lv1, mu2, lv2):
    # KL( N(mu1, exp(lv1)) || N(mu2, exp(lv2)) ), summed over the latent dim.
    # TODO(synk): the reference `kl_loss` helper is not in the provided source;
    # this is the standard diagonal-Gaussian KL used by TD-VAE codebases.
    return 0.5 * jnp.sum(
        lv2 - lv1 - 1.0 + jnp.exp(lv1 - lv2) + (mu1 - mu2) ** 2 * jnp.exp(-lv2),
        axis=-1, keepdims=True)


# --------------------------------------------------------------------------
# Static layout shared by host-side packing and the kernel.
# --------------------------------------------------------------------------
def _layout(hidden, latent):
    h0 = _rup(3 * hidden, 128)                       # belief hidden (padded)
    h1 = _rup(3 * (hidden + latent), 128)            # transition hidden
    h2 = _rup(3 * (2 * hidden + latent), 128)        # back-inference hidden
    in_sizes = (hidden, hidden + latent, 2 * hidden + latent)
    g_offs = (0, in_sizes[0], in_sizes[0] + in_sizes[1])
    return dict(
        hpads=(h0, h1, h2),
        gate_width=2 * max(h0, h1, h2),
        in_sizes=in_sizes,
        g_offs=g_offs,
        g_rows=_rup(sum(in_sizes), 8),
        h_offs=(0, h0, h0 + h1),
        h_rows=h0 + h1 + h2,
        head_width=_rup(2 * latent, 128),
    )


# --------------------------------------------------------------------------
# Host-side parameter packing (call ONCE, reuse the device arrays).
#   gate slab (bf16): rows = [belief in | trans in | backinf in]
#                     cols = [w1 | pad-to-hpad | w2 | pad]
#   head slab (bf16): rows = [belief hpad | trans hpad | backinf hpad]
#                     cols = [w_mu (latent) | w_logvar (latent) | pad-to-128]
#   bias slab (f32) : rows 0..2 gate biases, rows 3..5 head biases
# --------------------------------------------------------------------------
def pack_tdvae_params(params, hidden, latent):
    assert hidden % 8 == 0 and latent % 8 == 0, "hidden/latent must be 8-aligned"
    L = _layout(hidden, latent)
    wg = np.zeros((L["g_rows"], L["gate_width"]), np.float32)
    wh = np.zeros((L["h_rows"], L["head_width"]), np.float32)
    bias = np.zeros((8, L["gate_width"]), np.float32)

    groups = [params[0:8], params[8:16], params[16:24]]
    for i, (w1, b1, w2, b2, wm, bm, wl, bl) in enumerate(groups):
        in_size = L["in_sizes"][i]
        hp = L["hpads"][i]
        hh = np.asarray(w1).shape[1]
        go, ho = L["g_offs"][i], L["h_offs"][i]
        wg[go:go + in_size, 0:hh] = np.asarray(w1)
        wg[go:go + in_size, hp:hp + hh] = np.asarray(w2)
        bias[i, 0:hh] = np.asarray(b1).reshape(-1)
        bias[i, hp:hp + hh] = np.asarray(b2).reshape(-1)
        wh[ho:ho + hh, 0:latent] = np.asarray(wm)
        wh[ho:ho + hh, latent:2 * latent] = np.asarray(wl)
        bias[3 + i, 0:latent] = np.asarray(bm).reshape(-1)
        bias[3 + i, latent:2 * latent] = np.asarray(bl).reshape(-1)

    return (jnp.asarray(wg, jnp.bfloat16),
            jnp.asarray(wh, jnp.bfloat16),
            jnp.asarray(bias, jnp.float32))


# --------------------------------------------------------------------------
# Kernel: single invocation over the flattened (B*S, H) belief states.
# --------------------------------------------------------------------------
def tdvae_kernel(hyp_ref, x_ref, wg_ref, wh_ref, b_ref, out_ref, *,
                 batch, splits, latent, hidden):
    L = _layout(hidden, latent)
    h0, h1, h2 = L["hpads"]
    g0, g1, g2 = L["g_offs"]
    hd0, hd1, hd2 = L["h_offs"]
    hw = L["head_width"]

    # Runtime hyperparameters from SMEM -> no recompile per sweep.
    beta_bp, beta_ib, beta_kl = hyp_ref[0], hyp_ref[1], hyp_ref[2]
    fb_bp, fb_ib, fb_kl = hyp_ref[3], hyp_ref[4], hyp_ref[5]

    n = batch * splits
    x = x_ref[...]                                   # (n, hidden) f32

    def gate_dot(act, roff, rn, width):
        # bf16 weights, f32 accumulate.
        return jnp.dot(act, wg_ref[roff:roff + rn, 0:width],
                       preferred_element_type=jnp.float32)

    def gate_act(hg, hp, width):
        return jnp.tanh(hg[:, :hp]) * jax.nn.sigmoid(hg[:, hp:width])

    def head(t, hoff, hp, hbias_row):
        ho = jnp.dot(t, wh_ref[hoff:hoff + hp, :],
                     preferred_element_type=jnp.float32)
        return ho + b_ref[hbias_row:hbias_row + 1, 0:hw]   # (n, hw)=[mu|logvar]

    # ---- belief_net DBlock ----
    wb = 2 * h0
    hg = gate_dot(x, g0, hidden, wb) + b_ref[0:1, 0:wb]
    ho_b = head(gate_act(hg, h0, wb), hd0, h0, 3)
    b_mu = ho_b[:, 0:latent]
    b_lv = ho_b[:, latent:2 * latent]
    z_b = b_mu                                       # connect(..., sample=False) -> mu

    # ---- transition_net DBlock on [x, z_b]  (K-split, no concat) ----
    wt = 2 * h1
    hg = (gate_dot(x, g1, hidden, wt)
          + gate_dot(z_b, g1 + hidden, latent, wt)
          + b_ref[1:2, 0:wt])
    ho_t = head(gate_act(hg, h1, wt), hd1, h1, 4)
    p_mu = ho_t[:, 0:latent]
    p_lv = ho_t[:, latent:2 * latent]

    # ---- back_inference_net on [x_prev, x, z_b]  (rolled rows, no concat) ----
    # Row j holds the pair (j-1, j); invalid rows masked below.
    x_prev = pltpu.roll(x, shift=1, axis=0)
    wi = 2 * h2
    hg = (gate_dot(x_prev, g2, hidden, wi)
          + gate_dot(x, g2 + hidden, hidden, wi)
          + gate_dot(z_b, g2 + 2 * hidden, latent, wi)
          + b_ref[2:3, 0:wi])
    ho_i = head(gate_act(hg, h2, wi), hd2, h2, 5)
    i_mu = ho_i[:, 0:latent]
    i_lv = ho_i[:, latent:2 * latent]

    # Rolled belief / predict stats so row j pairs distribution (j-1) with (j).
    ho_tp = pltpu.roll(ho_t, shift=1, axis=0)
    ho_bp = pltpu.roll(ho_b, shift=1, axis=0)
    pp_mu, pp_lv = ho_tp[:, 0:latent], ho_tp[:, latent:2 * latent]
    bp_mu, bp_lv = ho_bp[:, 0:latent], ho_bp[:, latent:2 * latent]

    # Pair mask: row j is a valid (j-1, j) pair unless j is a paragraph start.
    row = lax.broadcasted_iota(jnp.int32, (n, 1), 0)
    pair_mask = ((row % splits) != 0).astype(jnp.float32)
    n_pairs = float(batch * (splits - 1))

    # ---- compute_all_kl_constraints (already averaged over batch) ----
    bp = jnp.maximum(_kl_rowwise(pp_mu, pp_lv, b_mu, b_lv), fb_bp)
    ib = jnp.maximum(_kl_rowwise(bp_mu, bp_lv, i_mu, i_lv), fb_ib)
    belief_predict_kl = beta_bp * (jnp.sum(bp * pair_mask) / n_pairs)
    infer_belief_kl = beta_ib * (jnp.sum(ib * pair_mask) / n_pairs)

    # NOTE: prior logvar is ones_like(), exactly as in the torch spec.
    bk = jnp.maximum(
        _kl_rowwise(b_mu, b_lv, jnp.zeros_like(b_mu), jnp.ones_like(b_lv)), fb_kl)
    pk = jnp.maximum(
        _kl_rowwise(p_mu, p_lv, jnp.zeros_like(p_mu), jnp.ones_like(p_lv)), fb_kl)
    ik = jnp.maximum(
        _kl_rowwise(i_mu, i_lv, jnp.zeros_like(i_mu), jnp.ones_like(i_lv)), fb_kl)
    kl_constraint = beta_kl * (jnp.mean(bk) + jnp.mean(pk)
                               + jnp.sum(ik * pair_mask) / n_pairs)

    # Pack 3 scalar losses into a lane-dense (1, 128) output row.
    lane = lax.broadcasted_iota(jnp.int32, (1, 128), 1)
    vals = (jnp.where(lane == 0, belief_predict_kl, 0.0)
            + jnp.where(lane == 1, infer_belief_kl, 0.0)
            + jnp.where(lane == 2, kl_constraint, 0.0))
    out_ref[...] = vals.astype(out_ref.dtype)


def tdvae_forward(belief_states, w_gate, w_head, biases, hyper, *, latent):
    bn, sn, hn = belief_states.shape
    x_flat = belief_states.reshape(bn * sn, hn).astype(jnp.float32)
    L = _layout(hn, latent)
    n = bn * sn

    flops = 2 * n * (sum(isz * 2 * hp for isz, hp in zip(L["in_sizes"], L["hpads"]))
                     + sum(L["hpads"]) * L["head_width"])
    transcendentals = n * (2 * sum(L["hpads"]) + 12 * latent)
    bytes_accessed = (x_flat.size * 4 + w_gate.size * 2 + w_head.size * 2
                      + biases.size * 4 + hyper.size * 4 + 512)

    kernel = functools.partial(tdvae_kernel, batch=bn, splits=sn,
                               latent=latent, hidden=hn)

    # TODO(synk): weight DMA could additionally be overlapped with the belief
    # matmuls via memory_space=pl.ANY + manual make_async_copy; skipped since
    # the shrunken bf16 slabs make the remaining transfer sub-microsecond.
    losses = pl.pallas_call(
        kernel,
        out_shape=jax.ShapeDtypeStruct((1, 128), jnp.float32),
        in_specs=[
            pl.BlockSpec(memory_space=pltpu.MemorySpace.SMEM),   # hyperparams
            pl.BlockSpec(memory_space=pltpu.MemorySpace.VMEM),   # belief states
            pl.BlockSpec(memory_space=pltpu.MemorySpace.VMEM),   # gate slab (bf16)
            pl.BlockSpec(memory_space=pltpu.MemorySpace.VMEM),   # head slab (bf16)
            pl.BlockSpec(memory_space=pltpu.MemorySpace.VMEM),   # bias slab (f32)
        ],
        out_specs=pl.BlockSpec(memory_space=pltpu.MemorySpace.VMEM),
        cost_estimate=pl.CostEstimate(flops=flops,
                                      transcendentals=transcendentals,
                                      bytes_accessed=bytes_accessed),
    )(hyper, x_flat, w_gate, w_head, biases)

    total_belief_predict = losses[0, 0]
    total_infer_belief = losses[0, 1]
    total_kl_constraint = losses[0, 2]
    # TODO(synk): reconstruction losses need the external autoregressive
    # decoder (plus word_drop / pad_sequence token plumbing); no standalone
    # Pallas equivalent, so they contribute zero here.
    zero = jnp.zeros((), jnp.float32)
    total_loss = total_belief_predict + total_infer_belief + total_kl_constraint
    return (total_loss, total_belief_predict, total_infer_belief,
            zero, zero, zero, total_kl_constraint)


# ---------------- pure-JAX reference (mirrors the torch control flow) ----------------
def _dblock_ref(x, p):
    w1, b1, w2, b2, wm, bm, wl, bl = p
    t = jnp.tanh(x @ w1 + b1) * jax.nn.sigmoid(x @ w2 + b2)
    return t @ wm + bm, t @ wl + bl


def _kl_ref(mu1, lv1, mu2, lv2):
    return 0.5 * jnp.sum(
        lv2 - lv1 - 1.0 + jnp.exp(lv1 - lv2) + (mu1 - mu2) ** 2 * jnp.exp(-lv2), -1)


def tdvae_reference(belief_states, params, *,
                    beta_belief_predict, beta_infer_belief, beta_kl_constraints,
                    freebit_infer_belief, freebit_belief_predict,
                    freebit_kl_constraints):
    bp_p, tp_p, ip_p = params[:8], params[8:16], params[16:24]
    tot_bp = tot_ib = tot_kl = 0.0
    for b in range(belief_states.shape[0]):
        x = belief_states[b]
        b_mu, b_lv = _dblock_ref(x, bp_p)
        z_b = b_mu
        p_mu, p_lv = _dblock_ref(jnp.concatenate([x, z_b], -1), tp_p)
        i_mu, i_lv = _dblock_ref(
            jnp.concatenate([x[:-1], x[1:], z_b[1:]], -1), ip_p)
        bpk = jnp.maximum(_kl_ref(p_mu[:-1], p_lv[:-1], b_mu[1:], b_lv[1:]),
                          freebit_belief_predict)
        ibk = jnp.maximum(_kl_ref(b_mu[:-1], b_lv[:-1], i_mu, i_lv),
                          freebit_infer_belief)
        bk = jnp.maximum(_kl_ref(b_mu, b_lv, jnp.zeros_like(b_mu), jnp.ones_like(b_lv)),
                         freebit_kl_constraints)
        pk = jnp.maximum(_kl_ref(p_mu, p_lv, jnp.zeros_like(p_mu), jnp.ones_like(p_lv)),
                         freebit_kl_constraints)
        ik = jnp.maximum(_kl_ref(i_mu, i_lv, jnp.zeros_like(i_mu), jnp.ones_like(i_lv)),
                         freebit_kl_constraints)
        tot_bp = tot_bp + beta_belief_predict * bpk.mean()
        tot_ib = tot_ib + beta_infer_belief * ibk.mean()
        tot_kl = tot_kl + beta_kl_constraints * (bk.mean() + pk.mean() + ik.mean())
    bn = belief_states.shape[0]
    tot_bp, tot_ib, tot_kl = tot_bp / bn, tot_ib / bn, tot_kl / bn
    z = jnp.zeros(())
    total = tot_bp + tot_ib + tot_kl
    return (total, tot_bp, tot_ib, z, z, z, tot_kl)


def dblock_params(key, in_size, hidden_size, out_size):
    ks = jax.random.split(key, 8)

    def lin(kw, kb, fan_in, fan_out):
        bound = 1.0 / np.sqrt(fan_in)
        w = jax.random.uniform(kw, (fan_in, fan_out), jnp.float32, -bound, bound)
        b = jax.random.uniform(kb, (1, fan_out), jnp.float32, -bound, bound)
        return w, b

    w1, b1 = lin(ks[0], ks[1], in_size, hidden_size)
    w2, b2 = lin(ks[2], ks[3], in_size, hidden_size)
    wm, bm = lin(ks[4], ks[5], hidden_size, out_size)
    wl, bl = lin(ks[6], ks[7], hidden_size, out_size)
    return [w1, b1, w2, b2, wm, bm, wl, bl]


if __name__ == "__main__":
    key = jax.random.PRNGKey(0)
    k_x, k_b, k_t, k_i = jax.random.split(key, 4)
    belief_states = jax.random.normal(k_x, (B, S, H), jnp.float32)

    belief_p = dblock_params(k_b, H, 3 * H, LATENT)
    trans_p = dblock_params(k_t, H + LATENT, 3 * (H + LATENT), LATENT)
    backinf_p = dblock_params(k_i, 2 * H + LATENT, 3 * (2 * H + LATENT), LATENT)
    params = belief_p + trans_p + backinf_p  # order matches kernel packing

    # Pack ONCE (amortized across training steps); reuse the device arrays.
    w_gate, w_head, biases = pack_tdvae_params(params, H, LATENT)

    hypers = dict(beta_belief_predict=1.0, beta_infer_belief=1.0,
                  beta_kl_constraints=0.1,
                  freebit_infer_belief=0.5, freebit_belief_predict=0.5,
                  freebit_kl_constraints=0.5)
    hyper_vec = jnp.array(
        [hypers["beta_belief_predict"], hypers["beta_infer_belief"],
         hypers["beta_kl_constraints"], hypers["freebit_belief_predict"],
         hypers["freebit_infer_belief"], hypers["freebit_kl_constraints"]],
        jnp.float32)

    fwd = jax.jit(functools.partial(tdvae_forward, latent=LATENT))
    out = fwd(belief_states, w_gate, w_head, biases, hyper_vec)
    out = jax.block_until_ready(out)

    ref = tdvae_reference(belief_states, params, **hypers)
    # Tolerance covers bf16 weight quantization only (activations stay f32).
    np.testing.assert_allclose(np.array(out), np.array(ref), rtol=1e-2, atol=1e-2)

    print("KERNEL_OK")
</pallas_src>

<mosaic_0001>
module attributes {stable_mosaic.version = 11 : i64} {
  func.func @tdvae_kernel(%arg0: memref<6xf32, #tpu.memory_space<smem>>, %arg1: memref<16x32xf32, #tpu.memory_space<vmem>>, %arg2: memref<160x512xbf16, #tpu.memory_space<vmem>>, %arg3: memref<640x128xbf16, #tpu.memory_space<vmem>>, %arg4: memref<8x512xf32, #tpu.memory_space<vmem>>, %arg5: memref<1x128xf32, #tpu.memory_space<vmem>>) attributes {dimension_semantics = [], scalar_prefetch = 0 : i64, scratch_operands = 0 : i64, tpu.core_type = #tpu.core_type<tc>} {
    %c0 = arith.constant 0 : index
    %0 = memref.load %arg0[%c0] : memref<6xf32, #tpu.memory_space<smem>>
    %c1 = arith.constant 1 : index
    %1 = memref.load %arg0[%c1] : memref<6xf32, #tpu.memory_space<smem>>
    %c2 = arith.constant 2 : index
    %2 = memref.load %arg0[%c2] : memref<6xf32, #tpu.memory_space<smem>>
    %c3 = arith.constant 3 : index
    %3 = memref.load %arg0[%c3] : memref<6xf32, #tpu.memory_space<smem>>
    %c4 = arith.constant 4 : index
    %4 = memref.load %arg0[%c4] : memref<6xf32, #tpu.memory_space<smem>>
    %c5 = arith.constant 5 : index
    %5 = memref.load %arg0[%c5] : memref<6xf32, #tpu.memory_space<smem>>
    %c0_0 = arith.constant 0 : index
    %c0_1 = arith.constant 0 : index
    %6 = vector.load %arg1[%c0_0, %c0_1] : memref<16x32xf32, #tpu.memory_space<vmem>>, vector<16x32xf32>
    %c0_2 = arith.constant 0 : index
    %c0_3 = arith.constant 0 : index
    %7 = vector.load %arg2[%c0_2, %c0_3] : memref<160x512xbf16, #tpu.memory_space<vmem>>, vector<32x256xbf16>
    %cst = arith.constant dense<0.000000e+00> : vector<16x256xf32>
    %8 = tpu.matmul %6, %7, %cst {dimension_numbers = #tpu.dot_dimension_numbers<[1], [0], [0], [1], [0, 0, 1, 1], [], []>} : vector<16x32xf32>, vector<32x256xbf16>, vector<16x256xf32> -> vector<16x256xf32>
    %c0_4 = arith.constant 0 : index
    %c0_5 = arith.constant 0 : index
    %9 = vector.load %arg4[%c0_4, %c0_5] : memref<8x512xf32, #tpu.memory_space<vmem>>, vector<1x256xf32>
    %10 = vector.broadcast %9 : vector<1x256xf32> to vector<16x256xf32>
    %11 = arith.addf %8, %10 : vector<16x256xf32>
    %12 = vector.extract_strided_slice %11 {offsets = [0, 0], sizes = [16, 128], strides = [1, 1]} : vector<16x256xf32> to vector<16x128xf32>
    %13 = math.tanh %12 : vector<16x128xf32>
    %14 = vector.extract_strided_slice %11 {offsets = [0, 128], sizes = [16, 128], strides = [1, 1]} : vector<16x256xf32> to vector<16x128xf32>
    %15 = arith.negf %14 : vector<16x128xf32>
    %16 = math.exp %15 : vector<16x128xf32>
    %cst_6 = arith.constant 1.000000e+00 : f32
    %17 = vector.broadcast %cst_6 : f32 to vector<16x128xf32>
    %18 = arith.addf %17, %16 : vector<16x128xf32>
    %19 = arith.divf %17, %18 : vector<16x128xf32>
    %20 = arith.mulf %13, %19 : vector<16x128xf32>
    %c0_7 = arith.constant 0 : index
    %c0_8 = arith.constant 0 : index
    %21 = vector.load %arg3[%c0_7, %c0_8] : memref<640x128xbf16, #tpu.memory_space<vmem>>, vector<128x128xbf16>
    %cst_9 = arith.constant dense<0.000000e+00> : vector<16x128xf32>
    %22 = tpu.matmul %20, %21, %cst_9 {dimension_numbers = #tpu.dot_dimension_numbers<[1], [0], [0], [1], [0, 0, 1, 1], [], []>} : vector<16x128xf32>, vector<128x128xbf16>, vector<16x128xf32> -> vector<16x128xf32>
    %c3_10 = arith.constant 3 : index
    %c0_11 = arith.constant 0 : index
    %23 = vector.load %arg4[%c3_10, %c0_11] : memref<8x512xf32, #tpu.memory_space<vmem>>, vector<1x128xf32>
    %24 = vector.broadcast %23 : vector<1x128xf32> to vector<16x128xf32>
    %25 = arith.addf %22, %24 : vector<16x128xf32>
    %26 = vector.extract_strided_slice %25 {offsets = [0, 0], sizes = [16, 16], strides = [1, 1]} : vector<16x128xf32> to vector<16x16xf32>
    %27 = vector.extract_strided_slice %25 {offsets = [0, 16], sizes = [16, 16], strides = [1, 1]} : vector<16x128xf32> to vector<16x16xf32>
    %c32 = arith.constant 32 : index
    %c0_12 = arith.constant 0 : index
    %28 = vector.load %arg2[%c32, %c0_12] : memref<160x512xbf16, #tpu.memory_space<vmem>>, vector<32x512xbf16>
    %cst_13 = arith.constant dense<0.000000e+00> : vector<16x512xf32>
    %29 = tpu.matmul %6, %28, %cst_13 {dimension_numbers = #tpu.dot_dimension_numbers<[1], [0], [0], [1], [0, 0, 1, 1], [], []>} : vector<16x32xf32>, vector<32x512xbf16>, vector<16x512xf32> -> vector<16x512xf32>
    %c64 = arith.constant 64 : index
    %c0_14 = arith.constant 0 : index
    %30 = vector.load %arg2[%c64, %c0_14] : memref<160x512xbf16, #tpu.memory_space<vmem>>, vector<16x512xbf16>
    %cst_15 = arith.constant dense<0.000000e+00> : vector<16x512xf32>
    %31 = tpu.matmul %26, %30, %cst_15 {dimension_numbers = #tpu.dot_dimension_numbers<[1], [0], [0], [1], [0, 0, 1, 1], [], []>} : vector<16x16xf32>, vector<16x512xbf16>, vector<16x512xf32> -> vector<16x512xf32>
    %32 = arith.addf %29, %31 : vector<16x512xf32>
    %c1_16 = arith.constant 1 : index
    %c0_17 = arith.constant 0 : index
    %33 = vector.load %arg4[%c1_16, %c0_17] : memref<8x512xf32, #tpu.memory_space<vmem>>, vector<1x512xf32>
    %34 = vector.broadcast %33 : vector<1x512xf32> to vector<16x512xf32>
    %35 = arith.addf %32, %34 : vector<16x512xf32>
    %36 = vector.extract_strided_slice %35 {offsets = [0, 0], sizes = [16, 256], strides = [1, 1]} : vector<16x512xf32> to vector<16x256xf32>
    %37 = math.tanh %36 : vector<16x256xf32>
    %38 = vector.extract_strided_slice %35 {offsets = [0, 256], sizes = [16, 256], strides = [1, 1]} : vector<16x512xf32> to vector<16x256xf32>
    %39 = arith.negf %38 : vector<16x256xf32>
    %40 = math.exp %39 : vector<16x256xf32>
    %cst_18 = arith.constant 1.000000e+00 : f32
    %41 = vector.broadcast %cst_18 : f32 to vector<16x256xf32>
    %42 = arith.addf %41, %40 : vector<16x256xf32>
    %43 = arith.divf %41, %42 : vector<16x256xf32>
    %44 = arith.mulf %37, %43 : vector<16x256xf32>
    %c128 = arith.constant 128 : index
    %c0_19 = arith.constant 0 : index
    %45 = vector.load %arg3[%c128, %c0_19] : memref<640x128xbf16, #tpu.memory_space<vmem>>, vector<256x128xbf16>
    %cst_20 = arith.constant dense<0.000000e+00> : vector<16x128xf32>
    %46 = tpu.matmul %44, %45, %cst_20 {dimension_numbers = #tpu.dot_dimension_numbers<[1], [0], [0], [1], [0, 0, 1, 1], [], []>} : vector<16x256xf32>, vector<256x128xbf16>, vector<16x128xf32> -> vector<16x128xf32>
    %c4_21 = arith.constant 4 : index
    %c0_22 = arith.constant 0 : index
    %47 = vector.load %arg4[%c4_21, %c0_22] : memref<8x512xf32, #tpu.memory_space<vmem>>, vector<1x128xf32>
    %48 = vector.broadcast %47 : vector<1x128xf32> to vector<16x128xf32>
    %49 = arith.addf %46, %48 : vector<16x128xf32>
    %50 = vector.extract_strided_slice %49 {offsets = [0, 0], sizes = [16, 16], strides = [1, 1]} : vector<16x128xf32> to vector<16x16xf32>
    %51 = vector.extract_strided_slice %49 {offsets = [0, 16], sizes = [16, 16], strides = [1, 1]} : vector<16x128xf32> to vector<16x16xf32>
    %c1_i32 = arith.constant 1 : i32
    %52 = tpu.dynamic_rotate %6 by %c1_i32 dim 0 : vector<16x32xf32>, i32 -> vector<16x32xf32>
    %c80 = arith.constant 80 : index
    %c0_23 = arith.constant 0 : index
    %53 = vector.load %arg2[%c80, %c0_23] : memref<160x512xbf16, #tpu.memory_space<vmem>>, vector<32x512xbf16>
    %cst_24 = arith.constant dense<0.000000e+00> : vector<16x512xf32>
    %54 = tpu.matmul %52, %53, %cst_24 {dimension_numbers = #tpu.dot_dimension_numbers<[1], [0], [0], [1], [0, 0, 1, 1], [], []>} : vector<16x32xf32>, vector<32x512xbf16>, vector<16x512xf32> -> vector<16x512xf32>
    %c112 = arith.constant 112 : index
    %c0_25 = arith.constant 0 : index
    %55 = vector.load %arg2[%c112, %c0_25] : memref<160x512xbf16, #tpu.memory_space<vmem>>, vector<32x512xbf16>
    %cst_26 = arith.constant dense<0.000000e+00> : vector<16x512xf32>
    %56 = tpu.matmul %6, %55, %cst_26 {dimension_numbers = #tpu.dot_dimension_numbers<[1], [0], [0], [1], [0, 0, 1, 1], [], []>} : vector<16x32xf32>, vector<32x512xbf16>, vector<16x512xf32> -> vector<16x512xf32>
    %57 = arith.addf %54, %56 : vector<16x512xf32>
    %c144 = arith.constant 144 : index
    %c0_27 = arith.constant 0 : index
    %58 = vector.load %arg2[%c144, %c0_27] : memref<160x512xbf16, #tpu.memory_space<vmem>>, vector<16x512xbf16>
    %cst_28 = arith.constant dense<0.000000e+00> : vector<16x512xf32>
    %59 = tpu.matmul %26, %58, %cst_28 {dimension_numbers = #tpu.dot_dimension_numbers<[1], [0], [0], [1], [0, 0, 1, 1], [], []>} : vector<16x16xf32>, vector<16x512xbf16>, vector<16x512xf32> -> vector<16x512xf32>
    %60 = arith.addf %57, %59 : vector<16x512xf32>
    %c2_29 = arith.constant 2 : index
    %c0_30 = arith.constant 0 : index
    %61 = vector.load %arg4[%c2_29, %c0_30] : memref<8x512xf32, #tpu.memory_space<vmem>>, vector<1x512xf32>
    %62 = vector.broadcast %61 : vector<1x512xf32> to vector<16x512xf32>
    %63 = arith.addf %60, %62 : vector<16x512xf32>
    %64 = vector.extract_strided_slice %63 {offsets = [0, 0], sizes = [16, 256], strides = [1, 1]} : vector<16x512xf32> to vector<16x256xf32>
    %65 = math.tanh %64 : vector<16x256xf32>
    %66 = vector.extract_strided_slice %63 {offsets = [0, 256], sizes = [16, 256], strides = [1, 1]} : vector<16x512xf32> to vector<16x256xf32>
    %67 = arith.negf %66 : vector<16x256xf32>
    %68 = math.exp %67 : vector<16x256xf32>
    %cst_31 = arith.constant 1.000000e+00 : f32
    %69 = vector.broadcast %cst_31 : f32 to vector<16x256xf32>
    %70 = arith.addf %69, %68 : vector<16x256xf32>
    %71 = arith.divf %69, %70 : vector<16x256xf32>
    %72 = arith.mulf %65, %71 : vector<16x256xf32>
    %c384 = arith.constant 384 : index
    %c0_32 = arith.constant 0 : index
    %73 = vector.load %arg3[%c384, %c0_32] : memref<640x128xbf16, #tpu.memory_space<vmem>>, vector<256x128xbf16>
    %cst_33 = arith.constant dense<0.000000e+00> : vector<16x128xf32>
    %74 = tpu.matmul %72, %73, %cst_33 {dimension_numbers = #tpu.dot_dimension_numbers<[1], [0], [0], [1], [0, 0, 1, 1], [], []>} : vector<16x256xf32>, vector<256x128xbf16>, vector<16x128xf32> -> vector<16x128xf32>
    %c5_34 = arith.constant 5 : index
    %c0_35 = arith.constant 0 : index
    %75 = vector.load %arg4[%c5_34, %c0_35] : memref<8x512xf32, #tpu.memory_space<vmem>>, vector<1x128xf32>
    %76 = vector.broadcast %75 : vector<1x128xf32> to vector<16x128xf32>
    %77 = arith.addf %74, %76 : vector<16x128xf32>
    %78 = vector.extract_strided_slice %77 {offsets = [0, 0], sizes = [16, 16], strides = [1, 1]} : vector<16x128xf32> to vector<16x16xf32>
    %79 = vector.extract_strided_slice %77 {offsets = [0, 16], sizes = [16, 16], strides = [1, 1]} : vector<16x128xf32> to vector<16x16xf32>
    %c1_i32_36 = arith.constant 1 : i32
    %80 = tpu.dynamic_rotate %49 by %c1_i32_36 dim 0 : vector<16x128xf32>, i32 -> vector<16x128xf32>
    %c1_i32_37 = arith.constant 1 : i32
    %81 = tpu.dynamic_rotate %25 by %c1_i32_37 dim 0 : vector<16x128xf32>, i32 -> vector<16x128xf32>
    %82 = vector.extract_strided_slice %80 {offsets = [0, 0], sizes = [16, 16], strides = [1, 1]} : vector<16x128xf32> to vector<16x16xf32>
    %83 = vector.extract_strided_slice %80 {offsets = [0, 16], sizes = [16, 16], strides = [1, 1]} : vector<16x128xf32> to vector<16x16xf32>
    %84 = vector.extract_strided_slice %81 {offsets = [0, 0], sizes = [16, 16], strides = [1, 1]} : vector<16x128xf32> to vector<16x16xf32>
    %85 = vector.extract_strided_slice %81 {offsets = [0, 16], sizes = [16, 16], strides = [1, 1]} : vector<16x128xf32> to vector<16x16xf32>
    %86 = tpu.iota {dimensions = array<i32: 0>} : vector<16x1xi32>
    %c8_i32 = arith.constant 8 : i32
    %c0_i32 = arith.constant 0 : i32
    %87 = arith.cmpi eq, %c8_i32, %c0_i32 : i32
    %c1_i32_38 = arith.constant 1 : i32
    %88 = arith.select %87, %c1_i32_38, %c8_i32 : i32
    %89 = vector.broadcast %88 : i32 to vector<16x1xi32>
    %90 = arith.remsi %86, %89 : vector<16x1xi32>
    %c0_i32_39 = arith.constant 0 : i32
    %91 = vector.broadcast %c0_i32_39 : i32 to vector<16x1xi32>
    %92 = arith.cmpi ne, %90, %91 : vector<16x1xi32>
    %c0_i32_40 = arith.constant 0 : i32
    %93 = vector.broadcast %c0_i32_40 : i32 to vector<16x1xi32>
    %94 = arith.cmpi slt, %90, %93 : vector<16x1xi32>
    %c0_i32_41 = arith.constant 0 : i32
    %95 = arith.cmpi slt, %88, %c0_i32_41 : i32
    %96 = vector.broadcast %95 : i1 to vector<16x1xi1>
    %97 = vector.broadcast %96 : vector<16x1xi1> to vector<16x1xi1>
    %98 = arith.xori %94, %97 : vector<16x1xi1>
    %99 = arith.andi %98, %92 : vector<16x1xi1>
    %100 = vector.broadcast %88 : i32 to vector<16x1xi32>
    %101 = arith.addi %90, %100 : vector<16x1xi32>
    %102 = arith.select %99, %101, %90 : vector<16x1xi1>, vector<16x1xi32>
    %c0_i32_42 = arith.constant 0 : i32
    %103 = vector.broadcast %c0_i32_42 : i32 to vector<16x1xi32>
    %104 = arith.cmpi ne, %102, %103 : vector<16x1xi32>
    %105 = arith.extui %104 : vector<16x1xi1> to vector<16x1xi32>
    %106 = arith.sitofp %105 : vector<16x1xi32> to vector<16x1xf32>
    %107 = arith.subf %27, %83 : vector<16x16xf32>
    %cst_43 = arith.constant 1.000000e+00 : f32
    %108 = vector.broadcast %cst_43 : f32 to vector<16x16xf32>
    %109 = arith.subf %107, %108 : vector<16x16xf32>
    %110 = arith.subf %83, %27 : vector<16x16xf32>
    %111 = math.exp %110 : vector<16x16xf32>
    %112 = arith.addf %109, %111 : vector<16x16xf32>
    %113 = arith.subf %82, %26 : vector<16x16xf32>
    %114 = arith.mulf %113, %113 : vector<16x16xf32>
    %cst_44 = arith.constant 0.000000e+00 : f32
    %115 = vector.broadcast %cst_44 : f32 to vector<16x16xf32>
    %116 = arith.subf %115, %27 : vector<16x16xf32>
    %117 = math.exp %116 : vector<16x16xf32>
    %118 = arith.mulf %114, %117 : vector<16x16xf32>
    %119 = arith.addf %112, %118 : vector<16x16xf32>
    %cst_45 = arith.constant dense<0.000000e+00> : vector<16xf32>
    %120 = vector.multi_reduction <add>, %119, %cst_45 [1] : vector<16x16xf32> to vector<16xf32>
    %121 = vector.shape_cast %120 : vector<16xf32> to vector<16x1xf32>
    %cst_46 = arith.constant 5.000000e-01 : f32
    %122 = vector.broadcast %cst_46 : f32 to vector<16x1xf32>
    %123 = arith.mulf %122, %121 : vector<16x1xf32>
    %124 = vector.broadcast %3 : f32 to vector<16x1xf32>
    %125 = arith.maximumf %123, %124 : vector<16x1xf32>
    %126 = arith.subf %79, %85 : vector<16x16xf32>
    %cst_47 = arith.constant 1.000000e+00 : f32
    %127 = vector.broadcast %cst_47 : f32 to vector<16x16xf32>
    %128 = arith.subf %126, %127 : vector<16x16xf32>
    %129 = arith.subf %85, %79 : vector<16x16xf32>
    %130 = math.exp %129 : vector<16x16xf32>
    %131 = arith.addf %128, %130 : vector<16x16xf32>
    %132 = arith.subf %84, %78 : vector<16x16xf32>
    %133 = arith.mulf %132, %132 : vector<16x16xf32>
    %cst_48 = arith.constant 0.000000e+00 : f32
    %134 = vector.broadcast %cst_48 : f32 to vector<16x16xf32>
    %135 = arith.subf %134, %79 : vector<16x16xf32>
    %136 = math.exp %135 : vector<16x16xf32>
    %137 = arith.mulf %133, %136 : vector<16x16xf32>
    %138 = arith.addf %131, %137 : vector<16x16xf32>
    %cst_49 = arith.constant dense<0.000000e+00> : vector<16xf32>
    %139 = vector.multi_reduction <add>, %138, %cst_49 [1] : vector<16x16xf32> to vector<16xf32>
    %140 = vector.shape_cast %139 : vector<16xf32> to vector<16x1xf32>
    %cst_50 = arith.constant 5.000000e-01 : f32
    %141 = vector.broadcast %cst_50 : f32 to vector<16x1xf32>
    %142 = arith.mulf %141, %140 : vector<16x1xf32>
    %143 = vector.broadcast %4 : f32 to vector<16x1xf32>
    %144 = arith.maximumf %142, %143 : vector<16x1xf32>
    %145 = arith.mulf %125, %106 : vector<16x1xf32>
    %146 = vector.shape_cast %145 : vector<16x1xf32> to vector<1x16x1xf32>
    %cst_51 = arith.constant dense<0.000000e+00> : vector<1xf32>
    %147 = vector.multi_reduction <add>, %146, %cst_51 [1, 2] : vector<1x16x1xf32> to vector<1xf32>
    %148 = vector.shape_cast %147 : vector<1xf32> to vector<1x1x1xf32>
    %149 = vector.extract %148[0, 0, 0] : f32 from vector<1x1x1xf32>
    %cst_52 = arith.constant 1.400000e+01 : f32
    %150 = arith.divf %149, %cst_52 : f32
    %151 = arith.mulf %0, %150 : f32
    %152 = arith.mulf %144, %106 : vector<16x1xf32>
    %153 = vector.shape_cast %152 : vector<16x1xf32> to vector<1x16x1xf32>
    %cst_53 = arith.constant dense<0.000000e+00> : vector<1xf32>
    %154 = vector.multi_reduction <add>, %153, %cst_53 [1, 2] : vector<1x16x1xf32> to vector<1xf32>
    %155 = vector.shape_cast %154 : vector<1xf32> to vector<1x1x1xf32>
    %156 = vector.extract %155[0, 0, 0] : f32 from vector<1x1x1xf32>
    %cst_54 = arith.constant 1.400000e+01 : f32
    %157 = arith.divf %156, %cst_54 : f32
    %158 = arith.mulf %1, %157 : f32
    %cst_55 = arith.constant 0.000000e+00 : f32
    %159 = vector.broadcast %cst_55 : f32 to vector<16x16xf32>
    %cst_56 = arith.constant 1.000000e+00 : f32
    %160 = vector.broadcast %cst_56 : f32 to vector<16x16xf32>
    %161 = arith.subf %160, %27 : vector<16x16xf32>
    %cst_57 = arith.constant 1.000000e+00 : f32
    %162 = vector.broadcast %cst_57 : f32 to vector<16x16xf32>
    %163 = arith.subf %161, %162 : vector<16x16xf32>
    %164 = arith.subf %27, %160 : vector<16x16xf32>
    %165 = math.exp %164 : vector<16x16xf32>
    %166 = arith.addf %163, %165 : vector<16x16xf32>
    %167 = arith.subf %26, %159 : vector<16x16xf32>
    %168 = arith.mulf %167, %167 : vector<16x16xf32>
    %cst_58 = arith.constant 0.000000e+00 : f32
    %169 = vector.broadcast %cst_58 : f32 to vector<16x16xf32>
    %170 = arith.subf %169, %160 : vector<16x16xf32>
    %171 = math.exp %170 : vector<16x16xf32>
    %172 = arith.mulf %168, %171 : vector<16x16xf32>
    %173 = arith.addf %166, %172 : vector<16x16xf32>
    %cst_59 = arith.constant dense<0.000000e+00> : vector<16xf32>
    %174 = vector.multi_reduction <add>, %173, %cst_59 [1] : vector<16x16xf32> to vector<16xf32>
    %175 = vector.shape_cast %174 : vector<16xf32> to vector<16x1xf32>
    %cst_60 = arith.constant 5.000000e-01 : f32
    %176 = vector.broadcast %cst_60 : f32 to vector<16x1xf32>
    %177 = arith.mulf %176, %175 : vector<16x1xf32>
    %178 = vector.broadcast %5 : f32 to vector<16x1xf32>
    %179 = arith.maximumf %177, %178 : vector<16x1xf32>
    %cst_61 = arith.constant 0.000000e+00 : f32
    %180 = vector.broadcast %cst_61 : f32 to vector<16x16xf32>
    %cst_62 = arith.constant 1.000000e+00 : f32
    %181 = vector.broadcast %cst_62 : f32 to vector<16x16xf32>
    %182 = arith.subf %181, %51 : vector<16x16xf32>
    %cst_63 = arith.constant 1.000000e+00 : f32
    %183 = vector.broadcast %cst_63 : f32 to vector<16x16xf32>
    %184 = arith.subf %182, %183 : vector<16x16xf32>
    %185 = arith.subf %51, %181 : vector<16x16xf32>
    %186 = math.exp %185 : vector<16x16xf32>
    %187 = arith.addf %184, %186 : vector<16x16xf32>
    %188 = arith.subf %50, %180 : vector<16x16xf32>
    %189 = arith.mulf %188, %188 : vector<16x16xf32>
    %cst_64 = arith.constant 0.000000e+00 : f32
    %190 = vector.broadcast %cst_64 : f32 to vector<16x16xf32>
    %191 = arith.subf %190, %181 : vector<16x16xf32>
    %192 = math.exp %191 : vector<16x16xf32>
    %193 = arith.mulf %189, %192 : vector<16x16xf32>
    %194 = arith.addf %187, %193 : vector<16x16xf32>
    %cst_65 = arith.constant dense<0.000000e+00> : vector<16xf32>
    %195 = vector.multi_reduction <add>, %194, %cst_65 [1] : vector<16x16xf32> to vector<16xf32>
    %196 = vector.shape_cast %195 : vector<16xf32> to vector<16x1xf32>
    %cst_66 = arith.constant 5.000000e-01 : f32
    %197 = vector.broadcast %cst_66 : f32 to vector<16x1xf32>
    %198 = arith.mulf %197, %196 : vector<16x1xf32>
    %199 = vector.broadcast %5 : f32 to vector<16x1xf32>
    %200 = arith.maximumf %198, %199 : vector<16x1xf32>
    %cst_67 = arith.constant 0.000000e+00 : f32
    %201 = vector.broadcast %cst_67 : f32 to vector<16x16xf32>
    %cst_68 = arith.constant 1.000000e+00 : f32
    %202 = vector.broadcast %cst_68 : f32 to vector<16x16xf32>
    %203 = arith.subf %202, %79 : vector<16x16xf32>
    %cst_69 = arith.constant 1.000000e+00 : f32
    %204 = vector.broadcast %cst_69 : f32 to vector<16x16xf32>
    %205 = arith.subf %203, %204 : vector<16x16xf32>
    %206 = arith.subf %79, %202 : vector<16x16xf32>
    %207 = math.exp %206 : vector<16x16xf32>
    %208 = arith.addf %205, %207 : vector<16x16xf32>
    %209 = arith.subf %78, %201 : vector<16x16xf32>
    %210 = arith.mulf %209, %209 : vector<16x16xf32>
    %cst_70 = arith.constant 0.000000e+00 : f32
    %211 = vector.broadcast %cst_70 : f32 to vector<16x16xf32>
    %212 = arith.subf %211, %202 : vector<16x16xf32>
    %213 = math.exp %212 : vector<16x16xf32>
    %214 = arith.mulf %210, %213 : vector<16x16xf32>
    %215 = arith.addf %208, %214 : vector<16x16xf32>
    %cst_71 = arith.constant dense<0.000000e+00> : vector<16xf32>
    %216 = vector.multi_reduction <add>, %215, %cst_71 [1] : vector<16x16xf32> to vector<16xf32>
    %217 = vector.shape_cast %216 : vector<16xf32> to vector<16x1xf32>
    %cst_72 = arith.constant 5.000000e-01 : f32
    %218 = vector.broadcast %cst_72 : f32 to vector<16x1xf32>
    %219 = arith.mulf %218, %217 : vector<16x1xf32>
    %220 = vector.broadcast %5 : f32 to vector<16x1xf32>
    %221 = arith.maximumf %219, %220 : vector<16x1xf32>
    %222 = vector.shape_cast %179 : vector<16x1xf32> to vector<1x16x1xf32>
    %cst_73 = arith.constant dense<0.000000e+00> : vector<1xf32>
    %223 = vector.multi_reduction <add>, %222, %cst_73 [1, 2] : vector<1x16x1xf32> to vector<1xf32>
    %224 = vector.shape_cast %223 : vector<1xf32> to vector<1x1x1xf32>
    %225 = vector.extract %224[0, 0, 0] : f32 from vector<1x1x1xf32>
    %cst_74 = arith.constant 1.600000e+01 : f32
    %226 = arith.divf %225, %cst_74 : f32
    %227 = vector.shape_cast %200 : vector<16x1xf32> to vector<1x16x1xf32>
    %cst_75 = arith.constant dense<0.000000e+00> : vector<1xf32>
    %228 = vector.multi_reduction <add>, %227, %cst_75 [1, 2] : vector<1x16x1xf32> to vector<1xf32>
    %229 = vector.shape_cast %228 : vector<1xf32> to vector<1x1x1xf32>
    %230 = vector.extract %229[0, 0, 0] : f32 from vector<1x1x1xf32>
    %cst_76 = arith.constant 1.600000e+01 : f32
    %231 = arith.divf %230, %cst_76 : f32
    %232 = arith.addf %226, %231 : f32
    %233 = arith.mulf %221, %106 : vector<16x1xf32>
    %234 = vector.shape_cast %233 : vector<16x1xf32> to vector<1x16x1xf32>
    %cst_77 = arith.constant dense<0.000000e+00> : vector<1xf32>
    %235 = vector.multi_reduction <add>, %234, %cst_77 [1, 2] : vector<1x16x1xf32> to vector<1xf32>
    %236 = vector.shape_cast %235 : vector<1xf32> to vector<1x1x1xf32>
    %237 = vector.extract %236[0, 0, 0] : f32 from vector<1x1x1xf32>
    %cst_78 = arith.constant 1.400000e+01 : f32
    %238 = arith.divf %237, %cst_78 : f32
    %239 = arith.addf %232, %238 : f32
    %240 = arith.mulf %2, %239 : f32
    %241 = tpu.iota {dimensions = array<i32: 1>} : vector<1x128xi32>
    %c0_i32_79 = arith.constant 0 : i32
    %242 = vector.broadcast %c0_i32_79 : i32 to vector<1x128xi32>
    %243 = arith.cmpi eq, %241, %242 : vector<1x128xi32>
    %cst_80 = arith.constant 0.000000e+00 : f32
    %244 = vector.broadcast %151 : f32 to vector<1x128xf32>
    %245 = vector.broadcast %cst_80 : f32 to vector<1x128xf32>
    %246 = arith.select %243, %244, %245 : vector<1x128xi1>, vector<1x128xf32>
    %c1_i32_81 = arith.constant 1 : i32
    %247 = vector.broadcast %c1_i32_81 : i32 to vector<1x128xi32>
    %248 = arith.cmpi eq, %241, %247 : vector<1x128xi32>
    %cst_82 = arith.constant 0.000000e+00 : f32
    %249 = vector.broadcast %158 : f32 to vector<1x128xf32>
    %250 = vector.broadcast %cst_82 : f32 to vector<1x128xf32>
    %251 = arith.select %248, %249, %250 : vector<1x128xi1>, vector<1x128xf32>
    %252 = arith.addf %246, %251 : vector<1x128xf32>
    %c2_i32 = arith.constant 2 : i32
    %253 = vector.broadcast %c2_i32 : i32 to vector<1x128xi32>
    %254 = arith.cmpi eq, %241, %253 : vector<1x128xi32>
    %cst_83 = arith.constant 0.000000e+00 : f32
    %255 = vector.broadcast %240 : f32 to vector<1x128xf32>
    %256 = vector.broadcast %cst_83 : f32 to vector<1x128xf32>
    %257 = arith.select %254, %255, %256 : vector<1x128xi1>, vector<1x128xf32>
    %258 = arith.addf %252, %257 : vector<1x128xf32>
    %c0_84 = arith.constant 0 : index
    %c0_85 = arith.constant 0 : index
    %259 = vector.load %arg5[%c0_84, %c0_85] : memref<1x128xf32, #tpu.memory_space<vmem>>, vector<1x128xf32>
    tpu.vector_store %arg5[%c0_84, %c0_85], %258 {strides = array<i32>} : memref<1x128xf32, #tpu.memory_space<vmem>>, vector<1x128xf32>,
    return
  }
}

</mosaic_0001>

<bundles_post_ra>
// kernel: tdvae_forward.1
= control target key start
LH: loop header
LB: loop body
LE: loop exit
PB: predicated region body
PF: predicated region fallthrough
CT: control target
= control target key end

     0   :  { %10 = vsyncpa [#allocation4], 0  ;;  %s2704_s0 = inlined_call_operand.vmem [shape: f32[6], index: 0, kind: input, shape index: {}]   ;;  %s2705_s1 = inlined_call_operand.hbm [shape: f32[16,32], index: 1, kind: input, shape index: {}]   ;;  %s2706_s2 = inlined_call_operand.hbm [shape: bf16[160,512], index: 2, kind: input, shape index: {}]   ;;  %s2707_s3 = inlined_call_operand.hbm [shape: bf16[640,128], index: 3, kind: input, shape index: {}]   ;;  %s2708_s4 = inlined_call_operand.hbm [shape: f32[8,512], index: 4, kind: input, shape index: {}]   ;;  %s2709_s5 = inlined_call_operand.vmem [shape: f32[1,128], index: 5, kind: output, shape index: {}]  }
   0x1   :  { %11 = vsyncpa [#allocation3], 0 }
   0x2   :  { %12 = vsyncpa [#allocation7], 0 }
   0x3   :  { %13 = vsyncpa [#allocation10], 0  ;;  %s2387_s18 = smov [#allocation6]   ;;  %s20_s22 = sshll.u32 %s2704_s0, 4  ;;  %s21_s22 = int_to_ptr.vmem [resolvable:$true] %s20_s22 }
   0x4   :  { %s41_s19 = sshll.u32 %s2387_s18, 4  ;;  %s2279_s25 = scalar_lea.hbm %s2706_s2, 5120  ;;  %s42_s19 = int_to_ptr.vmem [resolvable:$true] %s41_s19 }
   0x5   :  { %p2280_p0 = scmp.ne.s32.totalorder %s2706_s2, %s2279_s25  ;;  %p2283_p1 = scmp.lt.u32.totalorder %s2279_s25, %s2706_s2 }
   0x7   :  { %p2285_p2 = pnand %p2283_p1, %p2280_p0 }
   0x9   :  { %2288 = shalt.err (!%p2285_p2)
}
   0xa   :  { %s2289_s30 = scalar_lea.vmem %s42_s19, 5120  ;;  %p2294_p4 = scmp.lt.s32.totalorder %s42_s19, %s42_s19 }
   0xb   :  { %p2290_p3 = scmp.ne.s32.totalorder %s42_s19, %s2289_s30  ;;  %p2295_p5 = scmp.lt.s32.totalorder %s2289_s30, %s2289_s30 }
   0xd   :  { %p2296_p6 = por %p2295_p5, %p2294_p4 }
   0xf   :  { %p2297_p7 = pnand %p2296_p6, %p2290_p3 }
  0x11   :  { %2300 = shalt.err (!%p2297_p7)
}
  0x12   :  { %s2388_s0 = smov 256   ;;  %s2389_s6 = smov 16  }
  0x13   :  { %47 = dma.hbm_to_vmem [thread:$0]  %s2706_s2, 5120, %s42_s19, [#allocation7], %s2388_s0, %s2388_s0, %s2389_s6  }
  0x14   :  { %s2301_s9 = scalar_lea.vmem %s21_s22, 16  ;;  %p2306_p9 = scmp.lt.s32.totalorder %s21_s22, %s21_s22 }
  0x15   :  { %p2302_p8 = scmp.ne.s32.totalorder %s21_s22, %s2301_s9  ;;  %p2307_p10 = scmp.lt.s32.totalorder %s2301_s9, %s2301_s9 }
  0x17   :  { %p2308_p11 = por %p2307_p10, %p2306_p9 }
  0x19   :  { %p2309_p12 = pnand %p2308_p11, %p2302_p8 }
  0x1b   :  { %2312 = shalt.err (!%p2309_p12)
}
  0x1c   :  { %s2390_s10 = smov [#allocation2]   ;;  %s2391_s11 = smov [#allocation5]  }
  0x1d   :  { %23 = dma.vmem_to_smem %s21_s22, 16, %s2390_s10, [#allocation4]  }
  0x1e   :  { %s29_s12 = sshll.u32 %s2391_s11, 4  ;;  %s2313_s15 = scalar_lea.hbm %s2705_s1, 256  ;;  %s30_s12 = int_to_ptr.vmem [resolvable:$true] %s29_s12 }
  0x1f   :  { %p2314_p13 = scmp.ne.s32.totalorder %s2705_s1, %s2313_s15  ;;  %p2317_p0 = scmp.lt.u32.totalorder %s2313_s15, %s2705_s1 }
  0x21   :  { %p2319_p1 = pnand %p2317_p0, %p2314_p13 }
  0x23   :  { %2322 = shalt.err (!%p2319_p1)
}
  0x24   :  { %s2323_s19 = scalar_lea.vmem %s30_s12, 256  ;;  %p2328_p3 = scmp.lt.s32.totalorder %s30_s12, %s30_s12 }
  0x25   :  { %p2324_p2 = scmp.ne.s32.totalorder %s30_s12, %s2323_s19  ;;  %p2329_p4 = scmp.lt.s32.totalorder %s2323_s19, %s2323_s19 }
  0x27   :  { %p2330_p5 = por %p2329_p4, %p2328_p3 }
  0x29   :  { %p2331_p6 = pnand %p2330_p5, %p2324_p2 }
  0x2b   :  { %2334 = shalt.err (!%p2331_p6)
}
  0x2c   :  { %s2392_s20 = smov 128   ;;  %s2393_s21 = smov 8  }
  0x2d   :  { %35 = dma.hbm_to_vmem [thread:$0]  %s2705_s1, 256, %s30_s12, [#allocation3], %s2392_s20, %s2392_s20, %s2393_s21  }
  0x2e   :  { %s2394_s24 = smov [#allocation8]   ;;  %s2335_s28 = scalar_lea.hbm %s2707_s3, 5120 }
  0x2f   :  { %s53_s25 = sshll.u32 %s2394_s24, 4  ;;  %p2336_p7 = scmp.ne.s32.totalorder %s2707_s3, %s2335_s28  ;;  %s54_s25 = int_to_ptr.vmem [resolvable:$true] %s53_s25 }
  0x30   :  { %p2339_p8 = scmp.lt.u32.totalorder %s2335_s28, %s2707_s3 }
  0x32   :  { %p2341_p9 = pnand %p2339_p8, %p2336_p7 }
  0x34   :  { %2344 = shalt.err (!%p2341_p9)
}
  0x35   :  { %s2345_s8 = scalar_lea.vmem %s54_s25, 5120  ;;  %p2350_p11 = scmp.lt.s32.totalorder %s54_s25, %s54_s25 }
  0x36   :  { %p2346_p10 = scmp.ne.s32.totalorder %s54_s25, %s2345_s8  ;;  %p2351_p12 = scmp.lt.s32.totalorder %s2345_s8, %s2345_s8 }
  0x38   :  { %p2352_p13 = por %p2351_p12, %p2350_p11 }
  0x3a   :  { %p2353_p0 = pnand %p2352_p13, %p2346_p10 }
  0x3c   :  { %2356 = shalt.err (!%p2353_p0)
}
  0x3d   :  { %s2395_s1 = smov 64   ;;  %s2396_s9 = smov 4  }
  0x3e   :  { %59 = dma.hbm_to_vmem [thread:$0]  %s2707_s3, 5120, %s54_s25, [#allocation7], %s2395_s1, %s2395_s1, %s2396_s9  }
  0x3f   :  { %s2397_s12 = smov [#allocation9]   ;;  %s2357_s16 = scalar_lea.hbm %s2708_s4, 512 }
  0x40   :  { %s66_s13 = sshll.u32 %s2397_s12, 4  ;;  %p2358_p1 = scmp.ne.s32.totalorder %s2708_s4, %s2357_s16  ;;  %s67_s13 = int_to_ptr.vmem [resolvable:$true] %s66_s13 }
  0x41   :  { %p2361_p2 = scmp.lt.u32.totalorder %s2357_s16, %s2708_s4 }
  0x43   :  { %p2363_p3 = pnand %p2361_p2, %p2358_p1 }
  0x45   :  { %2366 = shalt.err (!%p2363_p3)
}
  0x46   :  { %s2367_s20 = scalar_lea.vmem %s67_s13, 512  ;;  %p2372_p5 = scmp.lt.s32.totalorder %s67_s13, %s67_s13 }
  0x47   :  { %p2368_p4 = scmp.ne.s32.totalorder %s67_s13, %s2367_s20  ;;  %p2373_p6 = scmp.lt.s32.totalorder %s2367_s20, %s2367_s20 }
  0x49   :  { %p2374_p7 = por %p2373_p6, %p2372_p5 }
  0x4b   :  { %p2375_p8 = pnand %p2374_p7, %p2368_p4 }
  0x4d   :  { %2378 = shalt.err (!%p2375_p8)
}
  0x4e   :  { %69 = dma.hbm_to_vmem [thread:$0]  %s2708_s4, 512, %s67_s13, [#allocation10]  }
  0x4f   :  { %2379 = dma.done.wait [#allocation4], 16  }
  0x50   :  { %2380 = vsyncadd [#allocation4], 4294967280 }
  0x51   :  { %2381 = dma.done.wait [#allocation3], 256  }
  0x52   :  { %2382 = vsyncadd [#allocation3], 4294967040 }
  0x53   :  { %2383 = dma.done.wait [#allocation7], 10240  }
  0x54   :  { %2384 = vsyncadd [#allocation7], 4294957056 }
  0x55   :  { %2385 = dma.done.wait [#allocation10], 512  }
  0x56   :  { %2386 = vsyncadd [#allocation10], 4294966784 }
  0x57   :  { %85 = sfence }
  0x58   :  { %v2097_v0 = vld [vmem:[#allocation6 + $0x4] ss:$16 sps:$4 sm:$0xff]   ;;  %v2099_v1 = vld [vmem:[#allocation6] ss:$16 sps:$4 sm:$0xff]   ;;  %v2398_v2 = vmov 0.0   ;;  %vm131_vm0 = vcmask 261120   ;;  %v101_v17 = vlaneseq }
  0x59   :  { %170 = vmatprep.mubr.f32.mxu0 %v2398_v2  ;;  %138 = vmatprep.subr.bf16.mxu0 %v2097_v0  ;;  %v2100_v3 = vld [vmem:[#allocation6 + $0x24] ss:$16 sps:$4 sm:$0xff]   ;;  %v2102_v4 = vld [vmem:[#allocation6 + $0x20] ss:$16 sps:$4 sm:$0xff]   ;;  %v2485_v6 = vld [vmem:[#allocation5 + $0x8] sm:$0xff]  ;;  %vm339_vm1 = vcmask 130048  }
  0x5a   :  { %139 = vmatpush1.bf16.msra.mxu0 %v2099_v1  ;;  %v2483_v5 = vld [vmem:[#allocation5] sm:$0xff]  ;;  %v2103_v7 = vld [vmem:[#allocation8] sm:$0xff]   ;;  %v2104_v8 = vld [vmem:[#allocation8 + $0x8] sm:$0xff]   ;;  %v2494_v18 = vshrl.u32 %v101_v17, 7  ;;  %s2399_s4 = smov 112   ;;  %s1850_s22 = sld [smem:[#allocation2 + $0x5]] }
  0x5b   :  { %140 = vmatprep.subr.bf16.mxu0 %v2100_v3  ;;  %2031 = vmatprep.subr.bf16.mxu1 %v2103_v7  ;;  %v2105_v9 = vld [vmem:[#allocation8 + $0x10] sm:$0xff]   ;;  %v2106_v10 = vld [vmem:[#allocation8 + $0x18] sm:$0xff]   ;;  %v2107_v11 = vld [vmem:[#allocation8 + $0x20] sm:$0xff]   ;;  %vm1606_vm5 = vcmask 7168   ;;  %s1849_s23 = sld [smem:[#allocation2 + $0x4]]  ;;  %s87_s24 = sld [smem:[#allocation2]] }
  0x5c   :  { %2032 = vmatpush3.bf16.msra.mxu1 %v2103_v7  ;;  %v2108_v12 = vld [vmem:[#allocation8 + $0x28] sm:$0xff]   ;;  %v2109_v13 = vld [vmem:[#allocation8 + $0x30] sm:$0xff]   ;;  %v2110_v14 = vld [vmem:[#allocation8 + $0x38] sm:$0xff]   ;;  %v2497_v19 = vsub.s32 1, %v2494_v18  ;;  %v2501_v28 = vsub.s32 0, %v2494_v18  ;;  %vm805_vm2 = vcmp.lt.s32.totalorder %v2494_v18, 1 }
  0x5d   :  { %2033 = vmatprep.subr.bf16.mxu1 %v2104_v8  ;;  %v2111_v15 = vld [vmem:[#allocation6 + $0x80] ss:$16 sps:$4 sm:$0xff]   ;;  %v2113_v16 = vld [vmem:[#allocation6 + $0x84] ss:$16 sps:$4 sm:$0xff]   ;;  %v2116_v44 = vld [vmem:[#allocation6 + $0x8c] ss:$16 sps:$4 sm:$0xff]  }
  0x5e   :  { %141 = vmatpush1.bf16.msra.mxu0 %v2102_v4  ;;  %v99_v20 = vld [vmem:[#allocation9] ss:$8 sm:$0x3]  ;;  %v215_v45 = vld [vmem:[#allocation9 + $0x3] ss:$0 sm:$0xff]  ;;  %s1846_s26 = sld [smem:[#allocation2 + $0x1]] }
  0x5f   :  { %346 = vmatprep.subr.bf16.mxu0 %v2113_v16  ;;  %v108_v21 = vrot.slane %v99_v20, %v2497_v19  ;;  %v104_v31 = vrot.slane %v99_v20, %v2501_v28  ;;  %v2114_v49 = vld [vmem:[#allocation6 + $0x88] ss:$16 sps:$4 sm:$0xff]   ;;  %v2119_v51 = vld [vmem:[#allocation6 + $0x44] ss:$16 sps:$4 sm:$0xff]   ;;  %v2117_v56 = vld [vmem:[#allocation6 + $0x40] ss:$16 sps:$4 sm:$0xff]  }
  0x60   :  { %2034 = vmatpush3.bf16.msra.mxu1 %v2104_v8  ;;  %v2122_v57 = vld [vmem:[#allocation6 + $0x64] ss:$16 sps:$4 sm:$0xff]   ;;  %v2120_v58 = vld [vmem:[#allocation6 + $0x60] ss:$16 sps:$4 sm:$0xff]   ;;  %v2125_v59 = vld [vmem:[#allocation6 + $0x4c] ss:$16 sps:$4 sm:$0xff]  }
  0x61   :  { %1855 = vmatmul.mubr.msk.f32.vlgmr.msra.gmra.mrb[0].mxu0 %vm131_vm0, %v2483_v5  ;;  %2035 = vmatprep.subr.bf16.mxu1 %v2105_v9  ;;  %v2123_v60 = vld [vmem:[#allocation6 + $0x48] ss:$16 sps:$4 sm:$0xff]   ;;  %v2128_v62 = vld [vmem:[#allocation6 + $0x6c] ss:$16 sps:$4 sm:$0xff]   ;;  %v2131_v1 = vld [vmem:[#allocation6 + $0xe4] ss:$16 sps:$4 sm:$0xff]  }
  0x62   :  { %176 = vmatprep.mubr.f32.mxu0 %v2398_v2  ;;  %347 = vmatpush1.bf16.msra.mxu0 %v2111_v15  ;;  %v2126_v63 = vld [vmem:[#allocation6 + $0x68] ss:$16 sps:$4 sm:$0xff]   ;;  %v2129_v3 = vld [vmem:[#allocation6 + $0xe0] ss:$16 sps:$4 sm:$0xff]   ;;  %v2134_v4 = vld [vmem:[#allocation6 + $0x104] ss:$16 sps:$4 sm:$0xff]  }
  0x63   :  { %391 = vmatprep.subr.bf16.mxu0 %v2116_v44  ;;  %v2132_v7 = vld [vmem:[#allocation6 + $0x100] ss:$16 sps:$4 sm:$0xff]   ;;  %v2137_v8 = vld [vmem:[#allocation6 + $0xec] ss:$16 sps:$4 sm:$0xff]   ;;  %v801_v16 = vrot.slane %v2483_v5, 7  ;;  %v802_v20 = vrot.slane %v2485_v6, 7 }
  0x64   :  { %2036 = vmatpush3.bf16.msra.mxu1 %v2105_v9  ;;  %v2135_v9 = vld [vmem:[#allocation6 + $0xe8] ss:$16 sps:$4 sm:$0xff]   ;;  %v2144_v15 = vld [vmem:[#allocation6 + $0xc0] ss:$16 sps:$4 sm:$0xff]   ;;  %s1847_s8 = sld [smem:[#allocation2 + $0x2]] }
  0x65   :  { %1856 = vmatmul.mubr.msk.f32.gmra.mrb[2].mxu0 %vm131_vm0, %v2485_v6  ;;  %2037 = vmatprep.subr.bf16.mxu1 %v2106_v10  ;;  %v2173_v44 = vld [vmem:[#allocation8 + $0xb8] sm:$0xff]  }
  0x66   :  { %378 = vmatprep.mubr.f32.mxu0 %v2398_v2 }
  0x68   :  { %2038 = vmatpush3.bf16.msra.mxu1 %v2106_v10  ;;  %v2140_v10 = vld [vmem:[#allocation6 + $0x10c] ss:$16 sps:$4 sm:$0xff]  }
  0x69   :  { %2039 = vmatprep.subr.bf16.mxu1 %v2107_v11 }
  0x6c   :  { %2040 = vmatpush3.bf16.msra.mxu1 %v2107_v11  ;;  %v2138_v11 = vld [vmem:[#allocation6 + $0x108] ss:$16 sps:$4 sm:$0xff]  }
  0x6d   :  { %2041 = vmatprep.subr.bf16.mxu1 %v2108_v12 }
  0x70   :  { %2042 = vmatpush3.bf16.msra.mxu1 %v2108_v12  ;;  %v2143_v12 = vld [vmem:[#allocation6 + $0xa4] ss:$16 sps:$4 sm:$0xff]  }
  0x71   :  { %2043 = vmatprep.subr.bf16.mxu1 %v2109_v13 }
  0x74   :  { %2044 = vmatpush3.bf16.msra.mxu1 %v2109_v13  ;;  %v2141_v13 = vld [vmem:[#allocation6 + $0xa0] ss:$16 sps:$4 sm:$0xff]  }
  0x75   :  { %2045 = vmatprep.subr.bf16.mxu1 %v2110_v14 }
  0x78   :  { %2046 = vmatpush3.bf16.msra.mxu1 %v2110_v14  ;;  %v2146_v14 = vld [vmem:[#allocation6 + $0xc4] ss:$16 sps:$4 sm:$0xff]  }
 0x134   :  { %v172_v22 = vpop.f32.mrb[0].mxu0 }
 0x135   :  { %v174_v23 = vpop.f32.mrb[1].mxu0  ;;  %v173_v32 = vadd.f32 %v172_v22, %v104_v31  ;;  %v2147_v22 = vld [vmem:[#allocation6 + $0xa8] ss:$16 sps:$4 sm:$0xff]  }
 0x136   :  { %v175_v24 = vadd.f32 %v174_v23, %v108_v21  ;;  %v807_v23 = vsel %vm805_vm2, %v802_v20, %v801_v16 }
 0x138   :  { %v1857_v25 = vmul.f32 -1.442695, %v175_v24  ;;  %v178_v26 = vpop.f32.mrb[2].mxu0  ;;  %v2152_v24 = vld [vmem:[#allocation6 + $0xcc] ss:$16 sps:$4 sm:$0xff]  }
 0x139   :  { %v180_v27 = vpop.f32.mrb[3].mxu0  ;;  %v179_v35 = vadd.f32 %v178_v26, %v104_v31  ;;  %v2153_v26 = vld [vmem:[#allocation6 + $0x120] ss:$16 sps:$4 sm:$0xff]  }
 0x13a   :  { %2191 = vpow2.f32 %v1857_v25  ;;  %v181_v29 = vadd.f32 %v180_v27, %v108_v21  ;;  %v2149_v21 = vld [vmem:[#allocation6 + $0xac] ss:$16 sps:$4 sm:$0xff]   ;;  %v2155_v25 = vld [vmem:[#allocation6 + $0x124] ss:$16 sps:$4 sm:$0xff]  }
 0x13b   :  { %v2158_v27 = vld [vmem:[#allocation6 + $0x12c] ss:$16 sps:$4 sm:$0xff]   ;;  %v2160_v31 = vld [vmem:[#allocation8 + $0x40] sm:$0xff]  }
 0x13c   :  { %v1858_v30 = vmul.f32 -1.442695, %v181_v29  ;;  %v2156_v29 = vld [vmem:[#allocation6 + $0x128] ss:$16 sps:$4 sm:$0xff]  }
 0x13e   :  { %2193 = vpow2.f32 %v1858_v30  ;;  %v2159_v30 = vld [vmem:[#allocation8 + $0x80] sm:$0xff]  }
 0x13f   :  { %2195 = vtanh.f32 %v173_v32  ;;  %1987 = vmatprep.subr.bf16.mxu1 %v2159_v30  ;;  %v2161_v32 = vld [vmem:[#allocation8 + $0x88] sm:$0xff]  }
 0x144   :  { %v2192_v33 = vpop.eup %2191 }
 0x145   :  { %v191_v34 = vadd.f32 1.0, %v2192_v33  ;;  %v2162_v33 = vld [vmem:[#allocation8 + $0x48] sm:$0xff]  }
 0x147   :  { %2197 = vrcp.f32 %v191_v34  ;;  %v2163_v34 = vld [vmem:[#allocation8 + $0x90] sm:$0xff]  }
 0x148   :  { %v2194_v36 = vpop.eup %2193  ;;  %2199 = vtanh.f32 %v179_v35  ;;  %v2164_v35 = vld [vmem:[#allocation8 + $0x50] sm:$0xff]  }
 0x149   :  { %v192_v37 = vadd.f32 1.0, %v2194_v36  ;;  %v2196_v38 = vpop.eup %2195  ;;  %v2165_v36 = vld [vmem:[#allocation8 + $0x98] sm:$0xff]  }
 0x14b   :  { %2201 = vrcp.f32 %v192_v37  ;;  %v2166_v37 = vld [vmem:[#allocation8 + $0x58] sm:$0xff]  }
 0x151   :  { %v2198_v39 = vpop.eup %2197 }
 0x152   :  { %v197_v40 = vmul.f32 %v2198_v39, %v2196_v38  ;;  %v2200_v41 = vpop.eup %2199  ;;  %v2167_v38 = vld [vmem:[#allocation8 + $0xa0] sm:$0xff]  }
 0x153   :  { %v2168_v39 = vld [vmem:[#allocation8 + $0x60] sm:$0xff]  }
 0x154   :  { %2047 = vmatprep.mubr.f32.mxu1 %v197_v40  ;;  %v2169_v40 = vld [vmem:[#allocation8 + $0xa8] sm:$0xff]  }
 0x155   :  { %v2202_v42 = vpop.eup %2201 }
 0x156   :  { %v198_v43 = vmul.f32 %v2202_v42, %v2200_v41  ;;  %v2170_v41 = vld [vmem:[#allocation8 + $0x68] sm:$0xff]   ;;  %v2171_v42 = vld [vmem:[#allocation8 + $0xb0] sm:$0xff]  }
 0x158   :  { %2048 = vmatmul.mubr.f32.vlgmr.msra.gmra.mrb[0].mxu1 %v198_v43  ;;  %v2172_v43 = vld [vmem:[#allocation8 + $0x70] sm:$0xff]  }
 0x159   :  { %1988 = vmatpush3.bf16.msra.mxu1 %v2160_v31 }
 0x15a   :  { %1989 = vmatprep.subr.bf16.mxu1 %v2161_v32  ;;  %v2176_v32 = vld [vmem:[#allocation8 + $0xc0] sm:$0xff]  }
 0x15d   :  { %1990 = vmatpush3.bf16.msra.mxu1 %v2162_v33 }
 0x15e   :  { %1991 = vmatprep.subr.bf16.mxu1 %v2163_v34  ;;  %v2177_v34 = vld [vmem:[#allocation8 + $0x108] sm:$0xff]  }
 0x161   :  { %1992 = vmatpush3.bf16.msra.mxu1 %v2164_v35 }
 0x162   :  { %1993 = vmatprep.subr.bf16.mxu1 %v2165_v36 }
 0x165   :  { %1994 = vmatpush3.bf16.msra.mxu1 %v2166_v37 }
 0x166   :  { %1995 = vmatprep.subr.bf16.mxu1 %v2167_v38 }
 0x169   :  { %1996 = vmatpush3.bf16.msra.mxu1 %v2168_v39  ;;  %v2178_v39 = vld [vmem:[#allocation8 + $0xc8] sm:$0xff]  }
 0x16a   :  { %1997 = vmatprep.subr.bf16.mxu1 %v2169_v40  ;;  %v2179_v40 = vld [vmem:[#allocation8 + $0x110] sm:$0xff]  }
 0x16d   :  { %1998 = vmatpush3.bf16.msra.mxu1 %v2170_v41  ;;  %v2180_v41 = vld [vmem:[#allocation8 + $0xd0] sm:$0xff]  }
 0x16e   :  { %1999 = vmatprep.subr.bf16.mxu1 %v2171_v42  ;;  %v2181_v42 = vld [vmem:[#allocation8 + $0x118] sm:$0xff]  }
 0x171   :  { %2000 = vmatpush3.bf16.msra.mxu1 %v2172_v43 }
 0x172   :  { %2001 = vmatprep.subr.bf16.mxu1 %v2173_v44 }
 0x22b   :  { %v2049_v46 = vpop.f32.mrb[0].mxu1 }
 0x22c   :  { %v2504_v47 = vadd.f32 %v2049_v46, %v215_v45  ;;  %v298_v48 = vpop.f32.mrb[1].mxu1  ;;  %v2175_v46 = vld [vmem:[#allocation8 + $0x100] sm:$0xff]  }
 0x22d   :  { %v2506_v50 = vadd.f32 %v298_v48, %v215_v45  ;;  %v2174_v45 = vld [vmem:[#allocation8 + $0x78] sm:$0xff]  }
 0x22e   :  { %v1501_v53 = vsub.f32 0.0, %v2504_v47  ;;  %2002 = vmatpush3.bf16.msra.mxu1 %v2174_v45  ;;  %v2182_v45 = vld [vmem:[#allocation8 + $0xd8] sm:$0xff]  }
 0x22f   :  { %1871 = vmatmul.mubr.msk.f32.vlgmr.msra.gmra.mrb[4].mxu0 %vm339_vm1, %v2506_v50  ;;  %v1500_v52 = vsub.f32 0.0, %v2506_v50  ;;  %2009 = vmatprep.subr.bf16.mxu1 %v2175_v46  ;;  %v2183_v46 = vld [vmem:[#allocation8 + $0x120] sm:$0xff]  }
 0x230   :  { %392 = vmatpush1.bf16.msra.mxu0 %v2114_v49  ;;  %384 = vmatprep.mubr.f32.mxu0 %v2398_v2  ;;  %v1504_v55 = vmul.f32 1.442695, %v1501_v53  ;;  %v567_v53 = vld [vmem:[#allocation9 + $0x1] ss:$8 sm:$0xf] }
 0x231   :  { %476 = vmatprep.subr.bf16.mxu0 %v2119_v51  ;;  %v1502_v54 = vmul.f32 1.442695, %v1500_v52  ;;  %v579_v51 = vsub.s32 2, %v2494_v18  ;;  %v583_v52 = vsub.s32 3, %v2494_v18 }
 0x233   :  { %1872 = vmatmul.mubr.msk.f32.gmra.mrb[6].mxu0 %vm339_vm1, %v2504_v47  ;;  %2203 = vpow2.f32 %v1502_v54 }
 0x234   :  { %423 = vmatprep.mubr.f32.mxu0 %v2398_v2  ;;  %2205 = vpow2.f32 %v1504_v55 }
 0x237   :  { %1873 = vmatmul.mubr.msk.f32.vlgmr.msra.gmra.mrb[8].mxu0 %vm339_vm1, %v2506_v50 }
 0x238   :  { %477 = vmatpush1.bf16.msra.mxu0 %v2117_v56  ;;  %429 = vmatprep.mubr.f32.mxu0 %v2398_v2  ;;  %v580_v56 = vrot.slane %v567_v53, %v579_v51 }
 0x239   :  { %478 = vmatprep.subr.bf16.mxu0 %v2122_v57  ;;  %v584_v57 = vrot.slane %v567_v53, %v583_v52 }
 0x23b   :  { %1874 = vmatmul.mubr.msk.f32.gmra.mrb[10].mxu0 %vm339_vm1, %v2504_v47 }
 0x23c   :  { %479 = vmatpush1.bf16.msra.mxu0 %v2120_v58  ;;  %508 = vmatprep.mubr.f32.mxu0 %v2398_v2 }
 0x23d   :  { %v2204_v61 = vpop.eup %2203  ;;  %521 = vmatprep.subr.bf16.mxu0 %v2125_v59 }
 0x23e   :  { %1508 = vrot.lane.b32.xlu0 %v2204_v61, %s2399_s4  ;;  %v2206_v0 = vpop.eup %2205 }
 0x23f   :  { %1883 = vmatmul.mubr.msk.f32.vlgmr.msra.gmra.mrb[4].mxu0 %vm131_vm0, %v2483_v5 }
 0x240   :  { %522 = vmatpush1.bf16.msra.mxu0 %v2123_v60  ;;  %514 = vmatprep.mubr.f32.mxu0 %v2398_v2 }
 0x241   :  { %523 = vmatprep.subr.bf16.mxu0 %v2128_v62 }
 0x242   :  { %1510 = vrot.lane.b32.xlu0 %v2206_v0, %s2399_s4 }
 0x243   :  { %1884 = vmatmul.mubr.msk.f32.gmra.mrb[6].mxu0 %vm131_vm0, %v2485_v6 }
 0x244   :  { %524 = vmatpush1.bf16.msra.mxu0 %v2126_v63  ;;  %553 = vmatprep.mubr.f32.mxu0 %v2398_v2 }
 0x245   :  { %864 = vmatprep.subr.bf16.mxu0 %v2131_v1 }
 0x247   :  { %1885 = vmatmul.mubr.msk.f32.vlgmr.msra.gmra.mrb[8].mxu0 %vm131_vm0, %v2483_v5 }
 0x248   :  { %865 = vmatpush1.bf16.msra.mxu0 %v2129_v3  ;;  %559 = vmatprep.mubr.f32.mxu0 %v2398_v2 }
 0x249   :  { %866 = vmatprep.subr.bf16.mxu0 %v2134_v4 }
 0x24b   :  { %1886 = vmatmul.mubr.msk.f32.gmra.mrb[10].mxu0 %vm131_vm0, %v2485_v6 }
 0x24c   :  { %867 = vmatpush1.bf16.msra.mxu0 %v2132_v7  ;;  %896 = vmatprep.mubr.f32.mxu0 %v2398_v2 }
 0x24d   :  { %909 = vmatprep.subr.bf16.mxu0 %v2137_v8  ;;  %v572_v8 = vrot.slane %v567_v53, %v2501_v28 }
 0x24f   :  { %1915 = vmatmul.mubr.msk.f32.vlgmr.msra.gmra.mrb[12].mxu0 %vm131_vm0, %v2483_v5 }
 0x250   :  { %910 = vmatpush1.bf16.msra.mxu0 %v2135_v9  ;;  %902 = vmatprep.mubr.f32.mxu0 %v2398_v2 }
 0x251   :  { %911 = vmatprep.subr.bf16.mxu0 %v2140_v10  ;;  %v576_v10 = vrot.slane %v567_v53, %v2497_v19 }
 0x253   :  { %1916 = vmatmul.mubr.msk.f32.gmra.mrb[14].mxu0 %vm131_vm0, %v2485_v6 }
 0x254   :  { %912 = vmatpush1.bf16.msra.mxu0 %v2138_v11  ;;  %941 = vmatprep.mubr.f32.mxu0 %v2398_v2 }
 0x255   :  { %1000 = vmatprep.subr.bf16.mxu0 %v2143_v12 }
 0x257   :  { %1917 = vmatmul.mubr.msk.f32.vlgmr.msra.gmra.mrb[16].mxu0 %vm131_vm0, %v2483_v5  ;;  %v2150_v5 = vld [vmem:[#allocation6 + $0xc8] ss:$16 sps:$4 sm:$0xff]  }
 0x258   :  { %1001 = vmatpush1.bf16.msra.mxu0 %v2141_v13  ;;  %947 = vmatprep.mubr.f32.mxu0 %v2398_v2 }
 0x259   :  { %1002 = vmatprep.subr.bf16.mxu0 %v2146_v14 }
 0x25b   :  { %1918 = vmatmul.mubr.msk.f32.gmra.mrb[18].mxu0 %vm131_vm0, %v2485_v6  ;;  %v806_v6 = vsel %vm805_vm2, %v801_v16, %v802_v20 }
 0x25c   :  { %1003 = vmatpush1.bf16.msra.mxu0 %v2144_v15  ;;  %1032 = vmatprep.mubr.f32.mxu0 %v2398_v2 }
 0x25d   :  { %1045 = vmatprep.subr.bf16.mxu0 %v2149_v21 }
 0x25f   :  { %1927 = vmatmul.mubr.msk.f32.vlgmr.msra.gmra.mrb[12].mxu0 %vm131_vm0, %v807_v23 }
 0x260   :  { %1046 = vmatpush1.bf16.msra.mxu0 %v2147_v22  ;;  %1038 = vmatprep.mubr.f32.mxu0 %v2398_v2 }
 0x261   :  { %1047 = vmatprep.subr.bf16.mxu0 %v2152_v24 }
 0x263   :  { %1928 = vmatmul.mubr.msk.f32.gmra.mrb[14].mxu0 %vm131_vm0, %v806_v6 }
 0x264   :  { %1048 = vmatpush1.bf16.msra.mxu0 %v2150_v5  ;;  %1077 = vmatprep.mubr.f32.mxu0 %v2398_v2 }
 0x265   :  { %1114 = vmatprep.subr.bf16.mxu0 %v2155_v25 }
 0x267   :  { %1929 = vmatmul.mubr.msk.f32.vlgmr.msra.gmra.mrb[16].mxu0 %vm131_vm0, %v807_v23 }
 0x268   :  { %1115 = vmatpush1.bf16.msra.mxu0 %v2153_v26  ;;  %1083 = vmatprep.mubr.f32.mxu0 %v2398_v2 }
 0x269   :  { %1159 = vmatprep.subr.bf16.mxu0 %v2158_v27 }
 0x26b   :  { %1930 = vmatmul.mubr.msk.f32.gmra.mrb[18].mxu0 %vm131_vm0, %v806_v6 }
 0x26c   :  { %1146 = vmatprep.mubr.f32.mxu0 %v2398_v2 }
 0x26f   :  { %1935 = vmatmul.mubr.msk.f32.vlgmr.msra.gmra.mrb[12].mxu0 %vm339_vm1, %v2506_v50 }
 0x270   :  { %1160 = vmatpush1.bf16.msra.mxu0 %v2156_v29  ;;  %1152 = vmatprep.mubr.f32.mxu0 %v2398_v2 }
 0x273   :  { %1936 = vmatmul.mubr.msk.f32.gmra.mrb[14].mxu0 %vm339_vm1, %v2504_v47 }
 0x274   :  { %1191 = vmatprep.mubr.f32.mxu0 %v2398_v2 }
 0x277   :  { %1937 = vmatmul.mubr.msk.f32.vlgmr.msra.gmra.mrb[16].mxu0 %vm339_vm1, %v2506_v50 }
 0x278   :  { %1197 = vmatprep.mubr.f32.mxu0 %v2398_v2 }
 0x27b   :  { %1938 = vmatmul.mubr.msk.f32.gmra.mrb[18].mxu0 %vm339_vm1, %v2504_v47 }
 0x312   :  { %v510_v48 = vpop.f32.mrb[4].mxu0 }
 0x313   :  { %v512_v49 = vpop.f32.mrb[5].mxu0  ;;  %v589_v11 = vadd.f32 %v572_v8, %v510_v48  ;;  %v1213_v48 = vld [vmem:[#allocation9 + $0x2] ss:$8 sm:$0xf] }
 0x314   :  { %v590_v12 = vadd.f32 %v576_v10, %v512_v49 }
 0x316   :  { %v516_v54 = vpop.f32.mrb[6].mxu0 }
 0x317   :  { %v518_v55 = vpop.f32.mrb[7].mxu0  ;;  %v593_v15 = vadd.f32 %v572_v8, %v516_v54  ;;  %v1226_v54 = vrot.slane %v1213_v48, %v579_v51 }
 0x318   :  { %v594_v20 = vadd.f32 %v576_v10, %v518_v55  ;;  %v1230_v55 = vrot.slane %v1213_v48, %v583_v52  ;;  %v1218_v10 = vrot.slane %v1213_v48, %v2501_v28 }
 0x31a   :  { %v555_v58 = vpop.f32.mrb[8].mxu0 }
 0x31b   :  { %v591_v59 = vadd.f32 %v580_v56, %v555_v58  ;;  %v557_v60 = vpop.f32.mrb[9].mxu0 }
 0x31c   :  { %v592_v61 = vadd.f32 %v584_v57, %v557_v60 }
 0x31d   :  { %v1887_v62 = vmul.f32 -1.442695, %v591_v59 }
 0x31e   :  { %v1888_v63 = vmul.f32 -1.442695, %v592_v61  ;;  %v561_v0 = vpop.f32.mrb[10].mxu0 }
 0x31f   :  { %2207 = vpow2.f32 %v1887_v62  ;;  %v595_v1 = vadd.f32 %v580_v56, %v561_v0  ;;  %v563_v3 = vpop.f32.mrb[11].mxu0  ;;  %v2184_v56 = vld [vmem:[#allocation8 + $0xe0] sm:$0xff]   ;;  %v2186_v62 = vld [vmem:[#allocation8 + $0xe8] sm:$0xff]   ;;  %v2187_v0 = vld [vmem:[#allocation8 + $0x130] sm:$0xff]  }
 0x320   :  { %2209 = vpow2.f32 %v1888_v63  ;;  %v596_v4 = vadd.f32 %v584_v57, %v563_v3  ;;  %v2185_v57 = vld [vmem:[#allocation8 + $0x128] sm:$0xff]  }
 0x321   :  { %v1889_v7 = vmul.f32 -1.442695, %v595_v1 }
 0x322   :  { %v1890_v9 = vmul.f32 -1.442695, %v596_v4 }
 0x323   :  { %2211 = vpow2.f32 %v1889_v7  ;;  %v2188_v7 = vld [vmem:[#allocation8 + $0xf0] sm:$0xff]  }
 0x324   :  { %2213 = vpow2.f32 %v1890_v9  ;;  %v2189_v9 = vld [vmem:[#allocation8 + $0x138] sm:$0xff]  }
 0x325   :  { %2215 = vtanh.f32 %v589_v11 }
 0x326   :  { %2217 = vtanh.f32 %v590_v12  ;;  %v1222_v12 = vrot.slane %v1213_v48, %v2497_v19 }
 0x329   :  { %v2208_v13 = vpop.eup %2207 }
 0x32a   :  { %v2210_v14 = vpop.eup %2209  ;;  %v613_v16 = vadd.f32 1.0, %v2208_v13  ;;  %v2190_v13 = vld [vmem:[#allocation8 + $0xf8] sm:$0xff]  }
 0x32b   :  { %v614_v21 = vadd.f32 1.0, %v2210_v14 }
 0x32c   :  { %2219 = vrcp.f32 %v613_v16 }
 0x32d   :  { %v2212_v22 = vpop.eup %2211  ;;  %2221 = vrcp.f32 %v614_v21 }
 0x32e   :  { %v2214_v23 = vpop.eup %2213  ;;  %2223 = vtanh.f32 %v593_v15  ;;  %v615_v24 = vadd.f32 1.0, %v2212_v22 }
 0x32f   :  { %2225 = vtanh.f32 %v594_v20  ;;  %v616_v5 = vadd.f32 1.0, %v2214_v23  ;;  %v2216_v6 = vpop.eup %2215 }
 0x330   :  { %2227 = vrcp.f32 %v615_v24  ;;  %v2218_v25 = vpop.eup %2217 }
 0x331   :  { %2229 = vrcp.f32 %v616_v5 }
 0x336   :  { %v2220_v26 = vpop.eup %2219 }
 0x337   :  { %v2222_v27 = vpop.eup %2221  ;;  %v625_v29 = vmul.f32 %v2220_v26, %v2216_v6 }
 0x338   :  { %v2224_v30 = vpop.eup %2223  ;;  %v626_v31 = vmul.f32 %v2222_v27, %v2218_v25 }
 0x339   :  { %v2226_v33 = vpop.eup %2225 }
 0x33a   :  { %v2228_v35 = vpop.eup %2227  ;;  %790 = vmatprep.mubr.f32.mxu1 %v626_v31 }
 0x33b   :  { %v2230_v36 = vpop.eup %2229  ;;  %791 = vmatmul.mubr.f32.vlgmr.msra.gmra.mrb[2].mxu1 %v625_v29  ;;  %v627_v37 = vmul.f32 %v2228_v35, %v2224_v30 }
 0x33c   :  { %v628_v38 = vmul.f32 %v2230_v36, %v2226_v33  ;;  %2010 = vmatpush3.bf16.msra.mxu1 %v2176_v32 }
 0x33d   :  { %2011 = vmatprep.subr.bf16.mxu1 %v2177_v34 }
 0x33e   :  { %795 = vmatprep.mubr.f32.mxu1 %v628_v38 }
 0x33f   :  { %796 = vmatmul.mubr.f32.gmra.mrb[4].mxu1 %v627_v37 }
 0x340   :  { %2012 = vmatpush3.bf16.msra.mxu1 %v2178_v39 }
 0x341   :  { %2013 = vmatprep.subr.bf16.mxu1 %v2179_v40 }
 0x342   :  { %v1148_v43 = vpop.f32.mrb[12].mxu0 }
 0x343   :  { %v1150_v44 = vpop.f32.mrb[13].mxu0  ;;  %v1235_v14 = vadd.f32 %v1218_v10, %v1148_v43 }
 0x344   :  { %2014 = vmatpush3.bf16.msra.mxu1 %v2180_v41  ;;  %v1236_v15 = vadd.f32 %v1222_v12, %v1150_v44  ;;  %v661_v41 = vld [vmem:[#allocation9 + $0x4] ss:$0 sm:$0xff] }
 0x345   :  { %2015 = vmatprep.subr.bf16.mxu1 %v2181_v42 }
 0x346   :  { %v1154_v49 = vpop.f32.mrb[14].mxu0 }
 0x347   :  { %v1156_v53 = vpop.f32.mrb[15].mxu0  ;;  %v1239_v21 = vadd.f32 %v1218_v10, %v1154_v49 }
 0x348   :  { %2016 = vmatpush3.bf16.msra.mxu1 %v2182_v45  ;;  %v1240_v23 = vadd.f32 %v1222_v12, %v1156_v53  ;;  %v1307_v12 = vld [vmem:[#allocation9 + $0x5] ss:$0 sm:$0xff] }
 0x349   :  { %2017 = vmatprep.subr.bf16.mxu1 %v2183_v46 }
 0x34a   :  { %v1193_v58 = vpop.f32.mrb[16].mxu0 }
 0x34b   :  { %v1237_v59 = vadd.f32 %v1226_v54, %v1193_v58  ;;  %v1195_v60 = vpop.f32.mrb[17].mxu0 }
 0x34c   :  { %v1238_v61 = vadd.f32 %v1230_v55, %v1195_v60  ;;  %2018 = vmatpush3.bf16.msra.mxu1 %v2184_v56  ;;  %v1509_v60 = vpop.permute.xlu0 %1508 }
 0x34d   :  { %v1939_v63 = vmul.f32 -1.442695, %v1237_v59  ;;  %2019 = vmatprep.subr.bf16.mxu1 %v2185_v57 }
 0x34e   :  { %v1940_v1 = vmul.f32 -1.442695, %v1238_v61  ;;  %v1199_v3 = vpop.f32.mrb[18].mxu0 }
 0x34f   :  { %2231 = vpow2.f32 %v1939_v63  ;;  %v1241_v51 = vadd.f32 %v1226_v54, %v1199_v3  ;;  %v1201_v4 = vpop.f32.mrb[19].mxu0 }
 0x350   :  { %2233 = vpow2.f32 %v1940_v1  ;;  %v1242_v52 = vadd.f32 %v1230_v55, %v1201_v4  ;;  %2020 = vmatpush3.bf16.msra.mxu1 %v2186_v62  ;;  %v1653_v62 = vmul.f32 %v2506_v50, %v2506_v50 }
 0x351   :  { %v1941_v8 = vmul.f32 -1.442695, %v1241_v51  ;;  %2021 = vmatprep.subr.bf16.mxu1 %v2187_v0 }
 0x352   :  { %v1942_v11 = vmul.f32 -1.442695, %v1242_v52  ;;  %v1655_v63 = vmul.f32 0.36787945, %v1653_v62 }
 0x353   :  { %2235 = vpow2.f32 %v1941_v8 }
 0x354   :  { %2237 = vpow2.f32 %v1942_v11  ;;  %2022 = vmatpush3.bf16.msra.mxu1 %v2188_v7 }
 0x355   :  { %2023 = vmatprep.subr.bf16.mxu1 %v2189_v9  ;;  %2239 = vtanh.f32 %v1235_v14  ;;  %v1451_v14 = vrot.slane %v2506_v50, 7 }
 0x356   :  { %2241 = vtanh.f32 %v1236_v15  ;;  %v1452_v15 = vrot.slane %v2504_v47, 7 }
 0x358   :  { %2024 = vmatpush3.bf16.msra.mxu1 %v2190_v13 }
 0x359   :  { %v2232_v16 = vpop.eup %2231 }
 0x35a   :  { %v2234_v20 = vpop.eup %2233  ;;  %v1259_v22 = vadd.f32 1.0, %v2232_v16 }
 0x35b   :  { %v1260_v24 = vadd.f32 1.0, %v2234_v20 }
 0x35c   :  { %2243 = vrcp.f32 %v1259_v22 }
 0x35d   :  { %v2236_v28 = vpop.eup %2235  ;;  %2245 = vrcp.f32 %v1260_v24 }
 0x35e   :  { %v2238_v19 = vpop.eup %2237  ;;  %2247 = vtanh.f32 %v1239_v21  ;;  %v1261_v5 = vadd.f32 1.0, %v2236_v28 }
 0x35f   :  { %2249 = vtanh.f32 %v1240_v23  ;;  %v1262_v6 = vadd.f32 1.0, %v2238_v19  ;;  %v2240_v25 = vpop.eup %2239  ;;  %v1454_v23 = vsel %vm805_vm2, %v1452_v15, %v1451_v14 }
 0x360   :  { %2251 = vrcp.f32 %v1261_v5  ;;  %v2242_v26 = vpop.eup %2241 }
 0x361   :  { %2253 = vrcp.f32 %v1262_v6 }
 0x366   :  { %v2244_v27 = vpop.eup %2243 }
 0x367   :  { %v2246_v29 = vpop.eup %2245  ;;  %v1271_v30 = vmul.f32 %v2244_v27, %v2240_v25  ;;  %v1453_v27 = vsel %vm805_vm2, %v1451_v14, %v1452_v15 }
 0x368   :  { %v2248_v31 = vpop.eup %2247  ;;  %v1272_v32 = vmul.f32 %v2246_v29, %v2242_v26 }
 0x369   :  { %v2250_v33 = vpop.eup %2249 }
 0x36a   :  { %v2252_v34 = vpop.eup %2251  ;;  %1436 = vmatprep.mubr.f32.mxu1 %v1272_v32 }
 0x36b   :  { %v2254_v35 = vpop.eup %2253  ;;  %1437 = vmatmul.mubr.f32.vlgmr.msra.gmra.mrb[6].mxu1 %v1271_v30  ;;  %v1273_v36 = vmul.f32 %v2252_v34, %v2248_v31 }
 0x36c   :  { %v1274_v37 = vmul.f32 %v2254_v35, %v2250_v33 }
 0x36e   :  { %1441 = vmatprep.mubr.f32.mxu1 %v1274_v37 }
 0x36f   :  { %1442 = vmatmul.mubr.f32.gmra.mrb[8].mxu1 %v1273_v36 }
 0x40e   :  { %v2003_v38 = vpop.f32.mrb[2].mxu1 }
 0x40f   :  { %v2004_v39 = vpop.f32.mrb[3].mxu1 }
 0x410   :  { %v2005_v40 = vadd.f32 %v2004_v39, %v2003_v38 }
 0x412   :  { %v2006_v42 = vpop.f32.mrb[4].mxu1  ;;  %v2588_v44 = vadd.f32 %v2005_v40, %v661_v41 }
 0x413   :  { %v2007_v43 = vpop.f32.mrb[5].mxu1 }
 0x414   :  { %v2008_v45 = vadd.f32 %v2007_v43, %v2006_v42  ;;  %v1447_v48 = vrot.slane %v2588_v44, 7  ;;  %v1698_v0 = vmul.f32 %v2588_v44, %v2588_v44  ;;  %v1511_v42 = vpop.permute.xlu0 %1510 }
 0x416   :  { %v2590_v46 = vadd.f32 %v2008_v45, %v661_v41  ;;  %v1700_v51 = vmul.f32 0.36787945, %v1698_v0 }
 0x418   :  { %v1448_v49 = vrot.slane %v2590_v46, 7 }
 0x41a   :  { %v1450_v53 = vsel %vm805_vm2, %v1448_v49, %v1447_v48  ;;  %v1449_v54 = vsel %vm805_vm2, %v1447_v48, %v1448_v49  ;;  %v1654_v48 = vmul.f32 %v2504_v47, %v2504_v47 }
 0x41b   :  { %v1490_v55 = vsub.f32 %v1450_v53, %v2506_v50  ;;  %v1491_v56 = vsub.f32 %v1449_v54, %v2504_v47  ;;  %v1486_v1 = vsub.f32 %v2506_v50, %v1450_v53  ;;  %v1487_v3 = vsub.f32 %v2504_v47, %v1449_v54 }
 0x41c   :  { %v1656_v49 = vmul.f32 0.36787945, %v1654_v48  ;;  %v1699_v53 = vmul.f32 %v2590_v46, %v2590_v46 }
 0x41d   :  { %v1498_v57 = vmul.f32 %v1490_v55, %v1490_v55  ;;  %v1492_v58 = vmul.f32 1.442695, %v1490_v55  ;;  %v1494_v59 = vmul.f32 1.442695, %v1491_v56  ;;  %v1961_v4 = vadd.f32 -1.0, %v1486_v1 }
 0x41e   :  { %v1962_v7 = vadd.f32 -1.0, %v1487_v3  ;;  %v1499_v38 = vmul.f32 %v1491_v56, %v1491_v56  ;;  %v1701_v54 = vmul.f32 0.36787945, %v1699_v53  ;;  %v1967_v55 = vadd.f32 -1.0, %v2506_v50 }
 0x41f   :  { %v1514_v61 = vmul.f32 %v1509_v60, %v1498_v57  ;;  %2255 = vpow2.f32 %v1492_v58  ;;  %v1968_v56 = vadd.f32 -1.0, %v2504_v47  ;;  %v1971_v57 = vadd.f32 -1.0, %v2588_v44 }
 0x420   :  { %2257 = vpow2.f32 %v1494_v59  ;;  %v1515_v45 = vmul.f32 %v1511_v42, %v1499_v38  ;;  %v1647_v58 = vmul.f32 1.442695, %v1967_v55 }
 0x421   :  { %1518 = vrot.lane.b32.xlu0 %v1514_v61, %s2389_s6  ;;  %v1649_v59 = vmul.f32 1.442695, %v1968_v56  ;;  %v1692_v60 = vmul.f32 1.442695, %v1971_v57  ;;  %v1972_v61 = vadd.f32 -1.0, %v2590_v46 }
 0x423   :  { %v1694_v3 = vmul.f32 1.442695, %v1972_v61 }
 0x425   :  { %1659 = vrot.lane.b32.xlu0 %v1655_v63, %s2389_s6 }
 0x429   :  { %v2256_v52 = vpop.eup %2255  ;;  %1704 = vrot.lane.b32.xlu0 %v1700_v51, %s2389_s6 }
 0x42a   :  { %v2258_v8 = vpop.eup %2257  ;;  %v2609_v9 = vadd.f32 %v2256_v52, %v1961_v4 }
 0x42b   :  { %v2611_v10 = vadd.f32 %v2258_v8, %v1962_v7  ;;  %v1641_v7 = vsub.f32 1.0, %v2506_v50  ;;  %v1686_v50 = vsub.f32 1.0, %v2588_v44 }
 0x43e   :  { %v2025_v11 = vpop.f32.mrb[6].mxu1 }
 0x43f   :  { %v2026_v13 = vpop.f32.mrb[7].mxu1 }
 0x440   :  { %v2027_v16 = vadd.f32 %v2026_v13, %v2025_v11 }
 0x442   :  { %v2615_v20 = vadd.f32 %v2027_v16, %v1307_v12  ;;  %v2028_v21 = vpop.f32.mrb[8].mxu1  ;;  %v1642_v16 = vsub.f32 1.0, %v2504_v47  ;;  %v1687_v47 = vsub.f32 1.0, %v2590_v46 }
 0x443   :  { %v2029_v22 = vpop.f32.mrb[9].mxu1 }
 0x444   :  { %v2030_v24 = vadd.f32 %v2029_v22, %v2028_v21  ;;  %v1559_v28 = vsub.f32 0.0, %v2615_v20  ;;  %v1549_v19 = vsub.f32 %v1454_v23, %v2615_v20  ;;  %v1545_v5 = vsub.f32 %v2615_v20, %v1454_v23 }
 0x445   :  { %v1742_v1 = vmul.f32 %v2615_v20, %v2615_v20  ;;  %v1965_v22 = vadd.f32 -1.0, %v1641_v7  ;;  %v1975_v46 = vadd.f32 -1.0, %v2615_v20 }
 0x446   :  { %v2622_v6 = vadd.f32 %v2030_v24, %v1307_v12  ;;  %v1561_v25 = vmul.f32 1.442695, %v1559_v28  ;;  %v1551_v26 = vmul.f32 1.442695, %v1549_v19  ;;  %v1963_v35 = vadd.f32 -1.0, %v1545_v5 }
 0x447   :  { %v1557_v62 = vmul.f32 %v1549_v19, %v1549_v19  ;;  %v1744_v11 = vmul.f32 0.36787945, %v1742_v1  ;;  %v1966_v5 = vadd.f32 -1.0, %v1642_v16  ;;  %v1736_v38 = vmul.f32 1.442695, %v1975_v46 }
 0x448   :  { %v1560_v29 = vsub.f32 0.0, %v2622_v6  ;;  %2259 = vpow2.f32 %v1561_v25  ;;  %v1550_v30 = vsub.f32 %v1453_v27, %v2622_v6  ;;  %v1546_v31 = vsub.f32 %v2622_v6, %v1453_v27 }
 0x449   :  { %2261 = vpow2.f32 %v1551_v26  ;;  %v1743_v12 = vmul.f32 %v2622_v6, %v2622_v6  ;;  %v1969_v27 = vadd.f32 -1.0, %v1686_v50  ;;  %v1731_v53 = vsub.f32 1.0, %v2622_v6 }
 0x44a   :  { %v1563_v32 = vmul.f32 1.442695, %v1560_v29  ;;  %v1553_v33 = vmul.f32 1.442695, %v1550_v30  ;;  %v1964_v40 = vadd.f32 -1.0, %v1546_v31  ;;  %v1558_v4 = vmul.f32 %v1550_v30, %v1550_v30 }
 0x44b   :  { %v1745_v23 = vmul.f32 0.36787945, %v1743_v12  ;;  %v1455_v50 = vadd.s32 8, %v2494_v18 }
 0x44c   :  { %2263 = vpow2.f32 %v1563_v32 }
 0x44d   :  { %2265 = vpow2.f32 %v1553_v33 }
 0x44e   :  { %2267 = vpow2.f32 %v1647_v58 }
 0x44f   :  { %2269 = vpow2.f32 %v1649_v59 }
 0x450   :  { %2271 = vpow2.f32 %v1692_v60  ;;  %v1974_v60 = vadd.f32 -1.0, %v1731_v53 }
 0x451   :  { %2273 = vpow2.f32 %v1694_v3 }
 0x452   :  { %v2260_v34 = vpop.eup %2259  ;;  %2275 = vpow2.f32 %v1736_v38 }
 0x453   :  { %v2262_v36 = vpop.eup %2261  ;;  %1567 = vrot.lane.b32.xlu1 %v2260_v34, %s2399_s4  ;;  %v1970_v34 = vadd.f32 -1.0, %v1687_v47 }
 0x454   :  { %v2630_v37 = vadd.f32 %v2262_v36, %v1963_v35 }
 0x456   :  { %v2264_v39 = vpop.eup %2263 }
 0x457   :  { %v2266_v41 = vpop.eup %2265  ;;  %1569 = vrot.lane.b32.xlu1 %v2264_v39, %s2399_s4  ;;  %v1976_v39 = vadd.f32 -1.0, %v2622_v6 }
 0x458   :  { %v2633_v43 = vadd.f32 %v2266_v41, %v1964_v40  ;;  %v2268_v13 = vpop.eup %2267  ;;  %v1730_v41 = vsub.f32 1.0, %v2615_v20 }
 0x459   :  { %v2270_v24 = vpop.eup %2269  ;;  %v1651_v28 = vadd.f32 %v2268_v13, %v1965_v22  ;;  %v1738_v40 = vmul.f32 1.442695, %v1976_v39 }
 0x45a   :  { %v2272_v19 = vpop.eup %2271  ;;  %v1652_v31 = vadd.f32 %v2270_v24, %v1966_v5  ;;  %v1460_v24 = vand.u32 7, %v2494_v18 }
 0x45b   :  { %1520 = vrot.lane.b32.xlu1 %v1515_v45, %s2389_s6  ;;  %v1696_v30 = vadd.f32 %v2272_v19, %v1969_v27  ;;  %v2274_v44 = vpop.eup %2273  ;;  %2277 = vpow2.f32 %v1738_v40  ;;  %v1467_v19 = vand.u32 7, %v1455_v50 }
 0x45c   :  { %v1697_v36 = vadd.f32 %v2274_v44, %v1970_v34  ;;  %v2276_v42 = vpop.eup %2275  ;;  %vm1480_vm3 = vcmp.ne.s32.totalorder %v1460_v24, 0 }
 0x45d   :  { %vm1481_vm4 = vcmp.ne.s32.totalorder %v1467_v19, 0 }
 0x45f   :  { %1661 = vrot.lane.b32.xlu1 %v1656_v49, %s2389_s6  ;;  %v1973_v49 = vadd.f32 -1.0, %v1730_v41 }
 0x463   :  { %1706 = vrot.lane.b32.xlu1 %v1701_v54, %s2389_s6  ;;  %v1740_v54 = vadd.f32 %v2276_v42, %v1973_v49 }
 0x465   :  { %v2278_v55 = vpop.eup %2277 }
 0x466   :  { %v1741_v20 = vadd.f32 %v2278_v55, %v1974_v60 }
 0x493   :  { %v1519_v51 = vpop.permute.xlu0 %1518 }
 0x494   :  { %v1524_v21 = vadd.f32 %v1519_v51, %v2609_v9 }
 0x497   :  { %v1660_v14 = vpop.permute.xlu0 %1659 }
 0x498   :  { %v1665_v26 = vadd.f32 %v1660_v14, %v1651_v28 }
 0x49b   :  { %v1705_v9 = vpop.permute.xlu0 %1704 }
 0x49c   :  { %v1710_v32 = vadd.f32 %v1705_v9, %v1696_v30  ;;  %v1960_v9 = vsel %vm1481_vm4, 1.0, %v2398_v2 }
 0x4c5   :  { %v1568_v63 = vpop.permute.xlu1 %1567 }
 0x4c6   :  { %v1573_v0 = vmul.f32 %v1568_v63, %v1557_v62 }
 0x4c8   :  { %1577 = vrot.lane.b32.xlu0 %v1573_v0, %s2389_s6 }
 0x4c9   :  { %v1570_v52 = vpop.permute.xlu1 %1569 }
 0x4ca   :  { %v1574_v8 = vmul.f32 %v1570_v52, %v1558_v4 }
 0x4cc   :  { %1748 = vrot.lane.b32.xlu0 %v1744_v11, %s2389_s6  ;;  %1579 = vrot.lane.b32.xlu1 %v1574_v8, %s2389_s6 }
 0x4cd   :  { %v1521_v15 = vpop.permute.xlu1 %1520 }
 0x4ce   :  { %v1525_v29 = vadd.f32 %v1521_v15, %v2611_v10 }
 0x4d0   :  { %1528 = vrot.lane.b32.xlu0 %v1524_v21, %s2399_s4  ;;  %1750 = vrot.lane.b32.xlu1 %v1745_v23, %s2389_s6  ;;  %s1848_s6 = sld [smem:[#allocation2 + $0x3]] }
 0x4d1   :  { %v1662_v25 = vpop.permute.xlu1 %1661 }
 0x4d2   :  { %v1666_v33 = vadd.f32 %v1662_v25, %v1652_v31 }
 0x4d4   :  { %1669 = vrot.lane.b32.xlu0 %v1665_v26, %s2399_s4  ;;  %1530 = vrot.lane.b32.xlu1 %v1525_v29, %s2399_s4  ;;  %v1959_v29 = vsel %vm1480_vm3, 1.0, %v2398_v2 }
 0x4d5   :  { %v1707_v35 = vpop.permute.xlu1 %1706 }
 0x4d6   :  { %v1711_v10 = vadd.f32 %v1707_v35, %v1697_v36  ;;  %v1542_v5 = vstv %s1848_s6 }
 0x4d8   :  { %1714 = vrot.lane.b32.xlu0 %v1710_v32, %s2399_s4  ;;  %1671 = vrot.lane.b32.xlu1 %v1666_v33, %s2399_s4  ;;  %v1683_v32 = vstv %s1850_s22 }
 0x4dc   :  { %1716 = vrot.lane.b32.xlu1 %v1711_v10, %s2399_s4 }
 0x53a   :  { %v1578_v45 = vpop.permute.xlu0 %1577 }
 0x53b   :  { %v1583_v48 = vadd.f32 %v1578_v45, %v2630_v37 }
 0x53d   :  { %1587 = vrot.lane.b32.xlu0 %v1583_v48, %s2399_s4  ;;  %v1601_v48 = vstv %s1849_s23 }
 0x53e   :  { %v1749_v56 = vpop.permute.xlu0 %1748  ;;  %v1580_v57 = vpop.permute.xlu1 %1579 }
 0x53f   :  { %v1754_v58 = vadd.f32 %v1749_v56, %v1740_v54  ;;  %v1584_v59 = vadd.f32 %v1580_v57, %v2633_v43 }
 0x541   :  { %1758 = vrot.lane.b32.xlu0 %v1754_v58, %s2399_s4  ;;  %1589 = vrot.lane.b32.xlu1 %v1584_v59, %s2399_s4 }
 0x542   :  { %v1751_v61 = vpop.permute.xlu1 %1750  ;;  %v1529_v62 = vpop.permute.xlu0 %1528 }
 0x543   :  { %v1755_v37 = vadd.f32 %v1751_v61, %v1741_v20  ;;  %v1534_v0 = vsel %vm339_vm1, %v1529_v62, 0.0 }
 0x545   :  { %1760 = vrot.lane.b32.xlu1 %v1755_v37, %s2399_s4 }
 0x546   :  { %v1531_v6 = vpop.permute.xlu1 %1530  ;;  %v1670_v43 = vpop.permute.xlu0 %1669 }
 0x547   :  { %v1537_v4 = vsel %vm339_vm1, %v1531_v6, 0.0  ;;  %v1675_v52 = vsel %vm339_vm1, %v1670_v43, 0.0 }
 0x54a   :  { %v1672_v63 = vpop.permute.xlu1 %1671  ;;  %v1715_v7 = vpop.permute.xlu0 %1714 }
 0x54b   :  { %v1678_v1 = vsel %vm339_vm1, %v1672_v63, 0.0  ;;  %v1720_v8 = vsel %vm339_vm1, %v1715_v7, 0.0 }
 0x54e   :  { %v1717_v3 = vpop.permute.xlu1 %1716 }
 0x54f   :  { %v1723_v51 = vsel %vm339_vm1, %v1717_v3, 0.0 }
 0x560   :  { %1535 = vadd.xlane.f32.xlu0 %v1534_v0 }
 0x564   :  { %1679 = vadd.xlane.f32.xlu0 %v1678_v1 }
 0x568   :  { %1724 = vadd.xlane.f32.xlu0 %v1723_v51 }
 0x569   :  { %1538 = vadd.xlane.f32.xlu1 %v1537_v4 }
 0x56d   :  { %1676 = vadd.xlane.f32.xlu1 %v1675_v52 }
 0x571   :  { %1721 = vadd.xlane.f32.xlu1 %v1720_v8 }
 0x5af   :  { %v1588_v11 = vpop.permute.xlu0 %1587 }
 0x5b0   :  { %v1593_v12 = vsel %vm339_vm1, %v1588_v11, 0.0 }
 0x5b1   :  { %1594 = vadd.xlane.f32.xlu0 %v1593_v12 }
 0x5b3   :  { %v1759_v13 = vpop.permute.xlu0 %1758  ;;  %v1590_v14 = vpop.permute.xlu1 %1589 }
 0x5b4   :  { %v1764_v15 = vsel %vm339_vm1, %v1759_v13, 0.0  ;;  %v1596_v16 = vsel %vm339_vm1, %v1590_v14, 0.0 }
 0x5b5   :  { %1765 = vadd.xlane.f32.xlu1 %v1764_v15  ;;  %1597 = vadd.xlane.f32.xlu0 %v1596_v16 }
 0x5b7   :  { %v1761_v21 = vpop.permute.xlu1 %1760 }
 0x5b8   :  { %v1767_v22 = vsel %vm339_vm1, %v1761_v21, 0.0 }
 0x5b9   :  { %1768 = vadd.xlane.f32.xlu0 %v1767_v22 }
 0x5ed   :  { %v1536_v23 = vpop.xlane.xlu0 %1535 }
 0x5ee   :  { %v1540_v28 = vmul.f32 0.5, %v1536_v23 }
 0x5f0   :  { %v1543_v25 = vmax.f32 %v1540_v28, %v1542_v5 }
 0x5f1   :  { %v1680_v26 = vpop.xlane.xlu0 %1679 }
 0x5f2   :  { %v1682_v30 = vmul.f32 0.5, %v1680_v26  ;;  %v1604_v44 = vmul.f32 %v1959_v29, %v1543_v25 }
 0x5f4   :  { %v1685_v35 = vmax.f32 %v1682_v30, %v1683_v32  ;;  %v1607_v10 = vsel %vm1606_vm5, %v1604_v44, 0.0 }
 0x5f5   :  { %v1725_v41 = vpop.xlane.xlu0 %1724 }
 0x5f6   :  { %v1539_v27 = vpop.xlane.xlu1 %1538  ;;  %v1775_v2 = vsel %vm1606_vm5, %v1685_v35, 0.0  ;;  %v1727_v59 = vmul.f32 0.5, %v1725_v41 }
 0x5f7   :  { %v1541_v47 = vmul.f32 0.5, %v1539_v27 }
 0x5f8   :  { %v1729_v0 = vmax.f32 %v1727_v59, %v1683_v32 }
 0x5f9   :  { %v1544_v31 = vmax.f32 %v1541_v47, %v1542_v5 }
 0x5fa   :  { %v1677_v33 = vpop.xlane.xlu1 %1676  ;;  %v1790_v8 = vsel %vm1606_vm5, %v1729_v0, 0.0 }
 0x5fb   :  { %v1681_v18 = vmul.f32 0.5, %v1677_v33  ;;  %v1605_v34 = vmul.f32 %v1960_v9, %v1544_v31 }
 0x5fd   :  { %v1684_v36 = vmax.f32 %v1681_v18, %v1683_v32  ;;  %v1608_v46 = vsel %vm1606_vm5, %v1605_v34, 0.0 }
 0x5fe   :  { %v1609_v38 = vadd.f32 %v1608_v46, %v1607_v10  ;;  %v1722_v42 = vpop.xlane.xlu1 %1721 }
 0x5ff   :  { %v1774_v39 = vsel %vm1606_vm5, %v1684_v36, 0.0  ;;  %v1726_v56 = vmul.f32 0.5, %v1722_v42 }
 0x600   :  { %1610 = vadd.xlane.f32.xlu1 %v1609_v38  ;;  %v1776_v40 = vadd.f32 %v1775_v2, %v1774_v39 }
 0x601   :  { %v1728_v6 = vmax.f32 %v1726_v56, %v1683_v32 }
 0x603   :  { %v1789_v52 = vsel %vm1606_vm5, %v1728_v6, 0.0 }
 0x604   :  { %1777 = vadd.xlane.f32.xlu1 %v1776_v40  ;;  %v1791_v13 = vadd.f32 %v1790_v8, %v1789_v52 }
 0x63e   :  { %v1595_v45 = vpop.xlane.xlu0 %1594 }
 0x63f   :  { %v1599_v49 = vmul.f32 0.5, %v1595_v45 }
 0x641   :  { %v1602_v53 = vmax.f32 %v1599_v49, %v1601_v48  ;;  %v1825_v49 = vand.u32 127, %v101_v17 }
 0x642   :  { %v1598_v54 = vpop.xlane.xlu0 %1597  ;;  %v1766_v55 = vpop.xlane.xlu1 %1765 }
 0x643   :  { %v1600_v57 = vmul.f32 0.5, %v1598_v54  ;;  %v1770_v58 = vmul.f32 0.5, %v1766_v55  ;;  %v1623_v61 = vmul.f32 %v1959_v29, %v1602_v53  ;;  %vm1829_vm6 = vcmp.eq.s32.totalorder %v1825_v49, 1 }
 0x644   :  { %vm1826_vm7 = vcmp.eq.s32.totalorder %v1825_v49, 0  ;;  %vm1833_vm8 = vcmp.eq.s32.totalorder %v1825_v49, 2 }
 0x645   :  { %v1603_v60 = vmax.f32 %v1600_v57, %v1601_v48  ;;  %v1772_v20 = vmax.f32 %v1770_v58, %v1683_v32  ;;  %v1625_v3 = vsel %vm1606_vm5, %v1623_v61, 0.0 }
 0x646   :  { %v1769_v37 = vpop.xlane.xlu0 %1768 }
 0x647   :  { %v1771_v62 = vmul.f32 0.5, %v1769_v37  ;;  %v1624_v63 = vmul.f32 %v1960_v9, %v1603_v60  ;;  %v1805_v51 = vmul.f32 %v1959_v29, %v1772_v20 }
 0x649   :  { %v1773_v1 = vmax.f32 %v1771_v62, %v1683_v32  ;;  %v1626_v43 = vsel %vm1606_vm5, %v1624_v63, 0.0  ;;  %v1807_v11 = vsel %vm1606_vm5, %v1805_v51, 0.0 }
 0x64a   :  { %v1627_v4 = vadd.f32 %v1626_v43, %v1625_v3 }
 0x64b   :  { %v1806_v7 = vmul.f32 %v1960_v9, %v1773_v1 }
 0x64c   :  { %1628 = vadd.xlane.f32.xlu0 %v1627_v4 }
 0x64d   :  { %v1808_v12 = vsel %vm1606_vm5, %v1806_v7, 0.0 }
 0x64e   :  { %v1809_v14 = vadd.f32 %v1808_v12, %v1807_v11 }
 0x650   :  { %1792 = vadd.xlane.f32.xlu0 %v1791_v13  ;;  %1810 = vadd.xlane.f32.xlu1 %v1809_v14 }
 0x68d   :  { %v1611_v15 = vpop.xlane.xlu1 %1610 }
 0x68e   :  { %v1612_v16 = vrot.slane %v1611_v15, 4 }
 0x690   :  { %v1613_v21 = vadd.f32 %v1612_v16, %v1611_v15 }
 0x691   :  { %v1778_v28 = vpop.xlane.xlu1 %1777 }
 0x692   :  { %v1614_v22 = vrot.slane %v1613_v21, 2  ;;  %v1779_v19 = vrot.slane %v1778_v28, 4 }
 0x694   :  { %v1615_v50 = vadd.f32 %v1614_v22, %v1613_v21  ;;  %v1780_v5 = vadd.f32 %v1779_v19, %v1778_v28 }
 0x696   :  { %v1616_v23 = vrot.slane %v1615_v50, 1  ;;  %v1781_v25 = vrot.slane %v1780_v5, 2 }
 0x698   :  { %v1617_v24 = vadd.f32 %v1616_v23, %v1615_v50  ;;  %v1782_v30 = vadd.f32 %v1781_v25, %v1780_v5 }
 0x69a   :  { %2074 = vpush %v1617_v24  ;;  %v1783_v35 = vrot.slane %v1782_v30, 1 }
 0x69c   :  { %v1784_v40 = vadd.f32 %v1783_v35, %v1782_v30 }
 0x6cb   :  { %s2075_s25 = spop %2074 }
 0x6cc   :  { %s1621_s27 = smul.f32 0.071428575, %s2075_s25 }
 0x6ce   :  { %s1622_s0 = smul.f32 %s1621_s27, %s87_s24 }
 0x6d0   :  { %v1827_v54 = vstv %s1622_s0 }
 0x6d1   :  { %v1828_v56 = vsel %vm1826_vm7, %v1827_v54, 0.0 }
 0x6d9   :  { %v1629_v26 = vpop.xlane.xlu0 %1628 }
 0x6da   :  { %v1630_v27 = vrot.slane %v1629_v26, 4 }
 0x6dc   :  { %v1631_v29 = vadd.f32 %v1630_v27, %v1629_v26 }
 0x6dd   :  { %v1793_v47 = vpop.xlane.xlu0 %1792  ;;  %v1811_v9 = vpop.xlane.xlu1 %1810 }
 0x6de   :  { %v1632_v31 = vrot.slane %v1631_v29, 2  ;;  %v1794_v44 = vrot.slane %v1793_v47, 4  ;;  %v1812_v32 = vrot.slane %v1811_v9, 4 }
 0x6e0   :  { %v1795_v33 = vadd.f32 %v1794_v44, %v1793_v47  ;;  %v1813_v18 = vadd.f32 %v1812_v32, %v1811_v9  ;;  %v1633_v34 = vadd.f32 %v1632_v31, %v1631_v29 }
 0x6e2   :  { %v1796_v36 = vrot.slane %v1795_v33, 2  ;;  %v1814_v10 = vrot.slane %v1813_v18, 2  ;;  %v1634_v46 = vrot.slane %v1633_v34, 1 }
 0x6e4   :  { %v1797_v38 = vadd.f32 %v1796_v36, %v1795_v33  ;;  %v1815_v39 = vadd.f32 %v1814_v10, %v1813_v18  ;;  %v1635_v2 = vadd.f32 %v1634_v46, %v1633_v34 }
 0x6e6   :  { %2076 = vpush %v1635_v2  ;;  %v1798_v41 = vrot.slane %v1797_v38, 1  ;;  %v1816_v42 = vrot.slane %v1815_v39, 1 }
 0x6e7   :  { %2078 = vpush %v1784_v40 }
 0x6e8   :  { %v1799_v45 = vadd.f32 %v1798_v41, %v1797_v38  ;;  %v1817_v48 = vadd.f32 %v1816_v42, %v1815_v39 }
 0x6ea   :  { %2080 = vpush %v1799_v45 }
 0x6eb   :  { %2082 = vpush %v1817_v48 }
 0x717   :  { %s2077_s28 = spop %2076 }
 0x718   :  { %s1639_s29 = smul.f32 0.071428575, %s2077_s28  ;;  %s2079_s30 = spop %2078 }
 0x719   :  { %s1788_s1 = smul.f32 0.0625, %s2079_s30 }
 0x71a   :  { %s1640_s7 = smul.f32 %s1846_s26, %s1639_s29 }
 0x71b   :  { %s2081_s9 = spop %2080 }
 0x71c   :  { %s1803_s10 = smul.f32 0.0625, %s2081_s9  ;;  %s2083_s11 = spop %2082  ;;  %v1830_v53 = vstv %s1640_s7 }
 0x71d   :  { %s1821_s13 = smul.f32 0.071428575, %s2083_s11  ;;  %v1831_v55 = vsel %vm1829_vm6, %v1830_v53, 0.0 }
 0x71e   :  { %s1804_s12 = sadd.f32 %s1803_s10, %s1788_s1  ;;  %v1832_v57 = vadd.f32 %v1831_v55, %v1828_v56 }
 0x720   :  { %s1822_s14 = sadd.f32 %s1821_s13, %s1804_s12 }
 0x722   :  { %s1823_s15 = smul.f32 %s1847_s8, %s1822_s14 }
 0x724   :  { %v1834_v58 = vstv %s1823_s15 }
 0x725   :  { %v1835_v59 = vsel %vm1833_vm8, %v1834_v58, 0.0 }
 0x726   :  { %v1836_v60 = vadd.f32 %v1835_v59, %v1832_v57 }
 0x728   :  { %1837 = vst [vmem:[%s2709_s5] sm:$0x1] %v1836_v60 }
 0x729   :  { %1842 = vsyncpa [#allocation3], 1 }
 0x72a   :  { %1843 = vsyncpa [#allocation7], 1 }
 0x72b   :  { %1844 = vsyncpa [#allocation10], 1 }
 0x72c   :  { %1845 = vsyncpa [#allocation4], 1 }

</bundles_post_ra>
